<compile_context>
chip_gen: v7x
topology: tpu7x:2x2x1
jax: 0.10.0
libtpu: 0.0.40
codegen_flags: <defaults>
</compile_context>

<pallas_src>
import functools

import jax
import jax.numpy as jnp
from jax.experimental import pallas as pl
from jax.experimental.pallas import tpu as pltpu

O_PAD = 128  # lane-dense output slab width


def qa_kernel(hidden_ref, mask_ref, invcnt_ref,
              w1_ref, b1_ref, w2_ref, b2_ref, w3_ref, b3_ref,
              out_ref, sum_emb_ref):
    s = pl.program_id(1)
    ns = pl.num_programs(1)

    # ---- init pooling accumulator at the first seq tile ---------------------
    @pl.when(s == 0)
    def _init():
        sum_emb_ref[...] = jnp.zeros_like(sum_emb_ref)

    # ---- streaming masked sum over this (TB, TS, D) tile --------------------
    mask_bf = mask_ref[...][:, None, :]                    # [TB, 1, TS] bf16 (0/1)
    # MXU contraction over the seq tile with f32 accumulation (bf16 0/1 mask and bf16
    # hidden values make every product exactly representable in the f32 accumulator).
    sum_emb_ref[...] += jnp.einsum(
        "bqs,bsd->bqd", mask_bf, hidden_ref[...],
        preferred_element_type=jnp.float32)

    # ---- finalize on the last seq tile: divide + MLP epilogue ---------------
    @pl.when(s == ns - 1)
    def _finalize():
        # invcnt = 1 / clamp(sum(mask), 1e-9) precomputed exactly (f32) in wrapper.
        pooled = sum_emb_ref[...][:, 0, :] * invcnt_ref[...]      # [TB, D] f32
        h1 = jnp.dot(pooled.astype(jnp.bfloat16), w1_ref[...],
                     preferred_element_type=jnp.float32) + b1_ref[...]
        h1 = jnp.maximum(h1, 0.0)
        h2 = jnp.dot(h1.astype(jnp.bfloat16), w2_ref[...],
                     preferred_element_type=jnp.float32) + b2_ref[...]
        h2 = jnp.maximum(h2, 0.0)
        out_ref[...] = jnp.dot(h2.astype(jnp.bfloat16), w3_ref[...],
                               preferred_element_type=jnp.float32) + b3_ref[...]


def prepare_params(params):
    """One-time prep (hoisted out of the per-call path): transpose nn.Linear [out,in]
    weights to [in,out], pad the last layer to a lane-dense 128-wide output and cast
    weights to bf16 (biases stay f32)."""
    w3 = params["w3"].T.astype(jnp.float32)                       # [32, O]
    b3 = params["b3"].reshape(1, -1).astype(jnp.float32)          # [1, O]
    O = w3.shape[1]
    w3p = jnp.zeros((w3.shape[0], O_PAD), jnp.float32).at[:, :O].set(w3)
    b3p = jnp.zeros((1, O_PAD), jnp.float32).at[:, :O].set(b3)
    return {
        "w1": params["w1"].T.astype(jnp.bfloat16),                # [D, H]
        "b1": params["b1"].reshape(1, -1).astype(jnp.float32),    # [1, H]
        "w2": params["w2"].T.astype(jnp.bfloat16),                # [H, 32]
        "b2": params["b2"].reshape(1, -1).astype(jnp.float32),    # [1, 32]
        "w3": w3p.astype(jnp.bfloat16),                           # [32, 128]
        "b3": b3p,                                                # [1, 128] f32
    }


@functools.partial(jax.jit, static_argnames=("out_dim",))
def qa_model_forward(hidden_states, attention_mask, prep, *, out_dim):
    """hidden_states: [B, S, D]; attention_mask: [B, S]; prep: prepare_params(...)."""
    B, S, D = hidden_states.shape
    LANE = 128

    # ---- tiling: TB=8 (sublane-aligned, keeps batch grid >= 2 for megacore), TS a
    # multiple of 128 sized so each step streams ~8 MiB of bf16 hidden bytes ---------
    TB = 8
    B_pad = ((B + TB - 1) // TB) * TB
    TARGET_BYTES = 8 * 1024 * 1024
    s_blocks_total = (S + LANE - 1) // LANE
    ts_blocks = max(1, min(s_blocks_total, TARGET_BYTES // (TB * D * 2 * LANE)))
    TS = ts_blocks * LANE
    S_pad = ((S + TS - 1) // TS) * TS
    grid = (B_pad // TB, S_pad // TS)

    # VMEM budget: double-buffered hidden tile + single-buffered weights + slack;
    # capped well under v7x's 64 MiB physical VMEM.
    hidden_tile_bytes = TB * TS * D * 2
    vmem_limit = int(min(48 * 1024 * 1024,
                         max(16 * 1024 * 1024,
                             2 * hidden_tile_bytes + 8 * 1024 * 1024)))

    # ---- input prep (fused inside this jit) ---------------------------------------
    # NOTE: if the producing transformer emits bf16 this cast is a no-op; otherwise
    # keep this wrapper jitted next to the producer so XLA can fuse the cast.
    hidden_bf = hidden_states.astype(jnp.bfloat16)
    mask_bf = attention_mask.astype(jnp.bfloat16)                 # 0/1, exact in bf16
    if B_pad != B or S_pad != S:
        hidden_bf = jnp.pad(hidden_bf, ((0, B_pad - B), (0, S_pad - S), (0, 0)))
        mask_bf = jnp.pad(mask_bf, ((0, B_pad - B), (0, S_pad - S)))
    counts = jnp.sum(mask_bf.astype(jnp.float32), axis=1, keepdims=True)  # [B_pad, 1]
    inv_counts = 1.0 / jnp.maximum(counts, 1e-9)    # torch.clamp(min=1e-9), exact div

    const = lambda b, s: (0, 0)
    resident = pl.Buffered(1)   # constant-index weights: single-buffer, stay resident

    out_padded = pl.pallas_call(
        qa_kernel,
        out_shape=jax.ShapeDtypeStruct((B_pad, O_PAD), jnp.float32),
        grid_spec=pltpu.PrefetchScalarGridSpec(
            num_scalar_prefetch=0,
            grid=grid,
            in_specs=[
                pl.BlockSpec((TB, TS, D), lambda b, s: (b, s, 0)),   # hidden stream
                pl.BlockSpec((TB, TS), lambda b, s: (b, s)),         # mask stream
                pl.BlockSpec((TB, 1), lambda b, s: (b, 0)),          # 1/clamp(count)
                pl.BlockSpec(prep["w1"].shape, const, pipeline_mode=resident),
                pl.BlockSpec(prep["b1"].shape, const, pipeline_mode=resident),
                pl.BlockSpec(prep["w2"].shape, const, pipeline_mode=resident),
                pl.BlockSpec(prep["b2"].shape, const, pipeline_mode=resident),
                pl.BlockSpec(prep["w3"].shape, const, pipeline_mode=resident),
                pl.BlockSpec(prep["b3"].shape, const, pipeline_mode=resident),
            ],
            out_specs=pl.BlockSpec((TB, O_PAD), lambda b, s: (b, 0)),
            scratch_shapes=[
                pltpu.VMEM((TB, 1, D), jnp.float32),   # running masked sum (f32)
            ],
        ),
        compiler_params=pltpu.CompilerParams(
            dimension_semantics=("parallel", "arbitrary"),
            vmem_limit_bytes=vmem_limit),
    )(hidden_bf, mask_bf, inv_counts,
      prep["w1"], prep["b1"], prep["w2"], prep["b2"], prep["w3"], prep["b3"])

    return out_padded[:B, :out_dim]


def init_params(key, input_dim, hidden_dim, output_dim):
    """Deterministic init of the MLP output_layer (the only params used in forward)."""
    ks = jax.random.split(key, 6)
    scale = 0.02
    return {
        # PyTorch nn.Linear layout: weight [out, in], bias [out]
        "w1": scale * jax.random.normal(ks[0], (hidden_dim, input_dim), jnp.float32),
        "b1": scale * jax.random.normal(ks[1], (hidden_dim,), jnp.float32),
        "w2": scale * jax.random.normal(ks[2], (32, hidden_dim), jnp.float32),
        "b2": scale * jax.random.normal(ks[3], (32,), jnp.float32),
        "w3": scale * jax.random.normal(ks[4], (output_dim, 32), jnp.float32),
        "b3": scale * jax.random.normal(ks[5], (output_dim,), jnp.float32),
    }


def reference_forward(hidden_states, attention_mask, params):
    """Pure-JAX reference reproducing the PyTorch semantics (f32 compute)."""
    mask = attention_mask.astype(jnp.float32)[:, :, None]
    h = hidden_states.astype(jnp.float32)
    sum_emb = jnp.sum(h * mask, axis=1)
    sum_mask = jnp.maximum(jnp.sum(mask, axis=1), 1e-9)   # torch.clamp(min=1e-9)
    pooled = sum_emb / sum_mask
    h1 = jax.nn.relu(pooled @ params["w1"].T + params["b1"])
    h2 = jax.nn.relu(h1 @ params["w2"].T + params["b2"])
    return h2 @ params["w3"].T + params["b3"]


if __name__ == "__main__":
    # Small but tile-friendly shapes: TB=8 (sublanes), TS multiple of 128 (lanes).
    B, S, D = 16, 256, 256          # input_dim = transformer hidden size (demo-scaled)
    HIDDEN, OUT = 128, 4

    key = jax.random.PRNGKey(0)
    k_h, k_l, k_p = jax.random.split(key, 3)

    # TODO(synk): transformer_layer (pretrained 'rinna/japanese-gpt2-medium') has no
    # Pallas equivalent; its last hidden state is emulated with deterministic random
    # bf16 values (same dtype the kernel streams, so kernel and reference see the
    # exact same data).
    hidden_states = jax.random.normal(k_h, (B, S, D), jnp.float32).astype(jnp.bfloat16)
    # attention mask: first `length` tokens valid per example (like tokenizer output)
    lengths = jax.random.randint(k_l, (B,), 1, S + 1)
    attention_mask = (jnp.arange(S)[None, :] < lengths[:, None]).astype(jnp.int32)

    params = init_params(k_p, input_dim=D, hidden_dim=HIDDEN, output_dim=OUT)
    prep = prepare_params(params)                  # one-time weight prep, outside jit

    out = qa_model_forward(hidden_states, attention_mask, prep, out_dim=OUT)
    out = jax.block_until_ready(out)

    ref = reference_forward(hidden_states, attention_mask, params)
    assert out.shape == (B, OUT), out.shape
    assert jnp.allclose(out, ref, atol=2e-3, rtol=2e-3), (
        "max abs diff:", float(jnp.max(jnp.abs(out - ref))))

    print("KERNEL_OK")
</pallas_src>

<mosaic_0001>
module attributes {stable_mosaic.version = 11 : i64} {
  func.func @qa_kernel(%arg0: i32, %arg1: i32, %arg2: memref<8x256x256xbf16, #tpu.memory_space<vmem>>, %arg3: memref<8x256xbf16, #tpu.memory_space<vmem>>, %arg4: memref<8x1xf32, #tpu.memory_space<vmem>>, %arg5: memref<256x128xbf16, #tpu.memory_space<vmem>>, %arg6: memref<1x128xf32, #tpu.memory_space<vmem>>, %arg7: memref<128x32xbf16, #tpu.memory_space<vmem>>, %arg8: memref<1x32xf32, #tpu.memory_space<vmem>>, %arg9: memref<32x128xbf16, #tpu.memory_space<vmem>>, %arg10: memref<1x128xf32, #tpu.memory_space<vmem>>, %arg11: memref<8x128xf32, #tpu.memory_space<vmem>>, %arg12: memref<8x1x256xf32, #tpu.memory_space<vmem>>) attributes {dimension_semantics = [#tpu.dimension_semantics<parallel>, #tpu.dimension_semantics<arbitrary>], iteration_bounds = array<i64: 2, 1>, scalar_prefetch = 0 : i64, scratch_operands = 1 : i64, tpu.core_type = #tpu.core_type<tc>, window_params = [{transform_indices = @transform_0, window_bounds = array<i64: 8, 256, 256>}, {transform_indices = @transform_1, window_bounds = array<i64: 8, 256>}, {transform_indices = @transform_2, window_bounds = array<i64: 8, 1>}, {pipeline_mode = #tpu.pipeline_mode<synchronous>, transform_indices = @transform_3, window_bounds = array<i64: 256, 128>}, {pipeline_mode = #tpu.pipeline_mode<synchronous>, transform_indices = @transform_4, window_bounds = array<i64: 1, 128>}, {pipeline_mode = #tpu.pipeline_mode<synchronous>, transform_indices = @transform_5, window_bounds = array<i64: 128, 32>}, {pipeline_mode = #tpu.pipeline_mode<synchronous>, transform_indices = @transform_6, window_bounds = array<i64: 1, 32>}, {pipeline_mode = #tpu.pipeline_mode<synchronous>, transform_indices = @transform_7, window_bounds = array<i64: 32, 128>}, {pipeline_mode = #tpu.pipeline_mode<synchronous>, transform_indices = @transform_8, window_bounds = array<i64: 1, 128>}, {transform_indices = @transform_9, window_bounds = array<i64: 8, 128>}]} {
    %c0_i32 = arith.constant 0 : i32
    %0 = arith.cmpi eq, %arg1, %c0_i32 : i32
    %1 = arith.extui %0 : i1 to i32
    %c0_i32_0 = arith.constant 0 : i32
    %2 = arith.cmpi ne, %1, %c0_i32_0 : i32
    scf.if %2 {
      %cst_13 = arith.constant 0.000000e+00 : f32
      %13 = vector.broadcast %cst_13 : f32 to vector<8x1x256xf32>
      %c0_14 = arith.constant 0 : index
      %c0_15 = arith.constant 0 : index
      %c0_16 = arith.constant 0 : index
      %14 = vector.load %arg12[%c0_14, %c0_15, %c0_16] : memref<8x1x256xf32, #tpu.memory_space<vmem>>, vector<8x1x256xf32>
      tpu.vector_store %arg12[%c0_14, %c0_15, %c0_16], %13 {strides = array<i32>} : memref<8x1x256xf32, #tpu.memory_space<vmem>>, vector<8x1x256xf32>,
    } else {
    }
    %c0 = arith.constant 0 : index
    %c0_1 = arith.constant 0 : index
    %3 = vector.load %arg3[%c0, %c0_1] : memref<8x256xbf16, #tpu.memory_space<vmem>>, vector<8x256xbf16>
    %4 = vector.shape_cast %3 : vector<8x256xbf16> to vector<8x1x256xbf16>
    %c0_2 = arith.constant 0 : index
    %c0_3 = arith.constant 0 : index
    %c0_4 = arith.constant 0 : index
    %5 = vector.load %arg12[%c0_2, %c0_3, %c0_4] : memref<8x1x256xf32, #tpu.memory_space<vmem>>, vector<8x1x256xf32>
    %c0_5 = arith.constant 0 : index
    %c0_6 = arith.constant 0 : index
    %c0_7 = arith.constant 0 : index
    %6 = vector.load %arg2[%c0_5, %c0_6, %c0_7] : memref<8x256x256xbf16, #tpu.memory_space<vmem>>, vector<8x256x256xbf16>
    "tpu.trace_start"() <{level = 10 : i32, message = "bqs,bsd->bqd"}> : () -> ()
    %cst = arith.constant dense<0.000000e+00> : vector<8x1x256xf32>
    %7 = tpu.matmul %4, %6, %cst {dimension_numbers = #tpu.dot_dimension_numbers<[2], [1], [1], [2], [0, 0, 0, 1, 1, 2], [0], [0]>} : vector<8x1x256xbf16>, vector<8x256x256xbf16>, vector<8x1x256xf32> -> vector<8x1x256xf32>
    "tpu.trace_stop"() : () -> ()
    %8 = arith.addf %5, %7 : vector<8x1x256xf32>
    %c0_8 = arith.constant 0 : index
    %c0_9 = arith.constant 0 : index
    %c0_10 = arith.constant 0 : index
    %9 = vector.load %arg12[%c0_8, %c0_9, %c0_10] : memref<8x1x256xf32, #tpu.memory_space<vmem>>, vector<8x1x256xf32>
    tpu.vector_store %arg12[%c0_8, %c0_9, %c0_10], %8 {strides = array<i32>} : memref<8x1x256xf32, #tpu.memory_space<vmem>>, vector<8x1x256xf32>,
    %c0_i32_11 = arith.constant 0 : i32
    %10 = arith.cmpi eq, %arg1, %c0_i32_11 : i32
    %11 = arith.extui %10 : i1 to i32
    %c0_i32_12 = arith.constant 0 : i32
    %12 = arith.cmpi ne, %11, %c0_i32_12 : i32
    scf.if %12 {
      %c0_13 = arith.constant 0 : index
      %c0_14 = arith.constant 0 : index
      %c0_15 = arith.constant 0 : index
      %13 = vector.load %arg12[%c0_13, %c0_14, %c0_15] : memref<8x1x256xf32, #tpu.memory_space<vmem>>, vector<8x1x256xf32>
      %14 = vector.shape_cast %13 : vector<8x1x256xf32> to vector<8x256xf32>
      %c0_16 = arith.constant 0 : index
      %c0_17 = arith.constant 0 : index
      %15 = vector.load %arg4[%c0_16, %c0_17] : memref<8x1xf32, #tpu.memory_space<vmem>>, vector<8x1xf32>
      %16 = vector.broadcast %15 : vector<8x1xf32> to vector<8x256xf32>
      %17 = arith.mulf %14, %16 : vector<8x256xf32>
      %18 = arith.truncf %17 : vector<8x256xf32> to vector<8x256xbf16>
      %c0_18 = arith.constant 0 : index
      %c0_19 = arith.constant 0 : index
      %19 = vector.load %arg5[%c0_18, %c0_19] : memref<256x128xbf16, #tpu.memory_space<vmem>>, vector<256x128xbf16>
      %cst_20 = arith.constant dense<0.000000e+00> : vector<8x128xf32>
      %20 = tpu.matmul %18, %19, %cst_20 {dimension_numbers = #tpu.dot_dimension_numbers<[1], [0], [0], [1], [0, 0, 1, 1], [], []>} : vector<8x256xbf16>, vector<256x128xbf16>, vector<8x128xf32> -> vector<8x128xf32>
      %c0_21 = arith.constant 0 : index
      %c0_22 = arith.constant 0 : index
      %21 = vector.load %arg6[%c0_21, %c0_22] : memref<1x128xf32, #tpu.memory_space<vmem>>, vector<1x128xf32>
      %22 = vector.broadcast %21 : vector<1x128xf32> to vector<8x128xf32>
      %23 = arith.addf %20, %22 : vector<8x128xf32>
      %cst_23 = arith.constant 0.000000e+00 : f32
      %24 = vector.broadcast %cst_23 : f32 to vector<8x128xf32>
      %25 = arith.maximumf %23, %24 : vector<8x128xf32>
      %26 = arith.truncf %25 : vector<8x128xf32> to vector<8x128xbf16>
      %c0_24 = arith.constant 0 : index
      %c0_25 = arith.constant 0 : index
      %27 = vector.load %arg7[%c0_24, %c0_25] : memref<128x32xbf16, #tpu.memory_space<vmem>>, vector<128x32xbf16>
      %cst_26 = arith.constant dense<0.000000e+00> : vector<8x32xf32>
      %28 = tpu.matmul %26, %27, %cst_26 {dimension_numbers = #tpu.dot_dimension_numbers<[1], [0], [0], [1], [0, 0, 1, 1], [], []>} : vector<8x128xbf16>, vector<128x32xbf16>, vector<8x32xf32> -> vector<8x32xf32>
      %c0_27 = arith.constant 0 : index
      %c0_28 = arith.constant 0 : index
      %29 = vector.load %arg8[%c0_27, %c0_28] : memref<1x32xf32, #tpu.memory_space<vmem>>, vector<1x32xf32>
      %30 = vector.broadcast %29 : vector<1x32xf32> to vector<8x32xf32>
      %31 = arith.addf %28, %30 : vector<8x32xf32>
      %cst_29 = arith.constant 0.000000e+00 : f32
      %32 = vector.broadcast %cst_29 : f32 to vector<8x32xf32>
      %33 = arith.maximumf %31, %32 : vector<8x32xf32>
      %34 = arith.truncf %33 : vector<8x32xf32> to vector<8x32xbf16>
      %c0_30 = arith.constant 0 : index
      %c0_31 = arith.constant 0 : index
      %35 = vector.load %arg9[%c0_30, %c0_31] : memref<32x128xbf16, #tpu.memory_space<vmem>>, vector<32x128xbf16>
      %cst_32 = arith.constant dense<0.000000e+00> : vector<8x128xf32>
      %36 = tpu.matmul %34, %35, %cst_32 {dimension_numbers = #tpu.dot_dimension_numbers<[1], [0], [0], [1], [0, 0, 1, 1], [], []>} : vector<8x32xbf16>, vector<32x128xbf16>, vector<8x128xf32> -> vector<8x128xf32>
      %c0_33 = arith.constant 0 : index
      %c0_34 = arith.constant 0 : index
      %37 = vector.load %arg10[%c0_33, %c0_34] : memref<1x128xf32, #tpu.memory_space<vmem>>, vector<1x128xf32>
      %38 = vector.broadcast %37 : vector<1x128xf32> to vector<8x128xf32>
      %39 = arith.addf %36, %38 : vector<8x128xf32>
      %c0_35 = arith.constant 0 : index
      %c0_36 = arith.constant 0 : index
      %40 = vector.load %arg11[%c0_35, %c0_36] : memref<8x128xf32, #tpu.memory_space<vmem>>, vector<8x128xf32>
      tpu.vector_store %arg11[%c0_35, %c0_36], %39 {strides = array<i32>} : memref<8x128xf32, #tpu.memory_space<vmem>>, vector<8x128xf32>,
    } else {
    }
    return
  }
  func.func @transform_0(%arg0: i32, %arg1: i32) -> (i32, i32, i32) {
    %c0_i32 = arith.constant 0 : i32
    %c0_i32_0 = arith.constant 0 : i32
    return %arg0, %arg1, %c0_i32 : i32, i32, i32
  }
  func.func @transform_1(%arg0: i32, %arg1: i32) -> (i32, i32) {
    %c0_i32 = arith.constant 0 : i32
    return %arg0, %arg1 : i32, i32
  }
  func.func @transform_2(%arg0: i32, %arg1: i32) -> (i32, i32) {
    %c0_i32 = arith.constant 0 : i32
    %c0_i32_0 = arith.constant 0 : i32
    return %arg0, %c0_i32 : i32, i32
  }
  func.func @transform_3(%arg0: i32, %arg1: i32) -> (i32, i32) {
    %c0_i32 = arith.constant 0 : i32
    %c0_i32_0 = arith.constant 0 : i32
    %c0_i32_1 = arith.constant 0 : i32
    return %c0_i32, %c0_i32_0 : i32, i32
  }
  func.func @transform_4(%arg0: i32, %arg1: i32) -> (i32, i32) {
    %c0_i32 = arith.constant 0 : i32
    %c0_i32_0 = arith.constant 0 : i32
    %c0_i32_1 = arith.constant 0 : i32
    return %c0_i32, %c0_i32_0 : i32, i32
  }
  func.func @transform_5(%arg0: i32, %arg1: i32) -> (i32, i32) {
    %c0_i32 = arith.constant 0 : i32
    %c0_i32_0 = arith.constant 0 : i32
    %c0_i32_1 = arith.constant 0 : i32
    return %c0_i32, %c0_i32_0 : i32, i32
  }
  func.func @transform_6(%arg0: i32, %arg1: i32) -> (i32, i32) {
    %c0_i32 = arith.constant 0 : i32
    %c0_i32_0 = arith.constant 0 : i32
    %c0_i32_1 = arith.constant 0 : i32
    return %c0_i32, %c0_i32_0 : i32, i32
  }
  func.func @transform_7(%arg0: i32, %arg1: i32) -> (i32, i32) {
    %c0_i32 = arith.constant 0 : i32
    %c0_i32_0 = arith.constant 0 : i32
    %c0_i32_1 = arith.constant 0 : i32
    return %c0_i32, %c0_i32_0 : i32, i32
  }
  func.func @transform_8(%arg0: i32, %arg1: i32) -> (i32, i32) {
    %c0_i32 = arith.constant 0 : i32
    %c0_i32_0 = arith.constant 0 : i32
    %c0_i32_1 = arith.constant 0 : i32
    return %c0_i32, %c0_i32_0 : i32, i32
  }
  func.func @transform_9(%arg0: i32, %arg1: i32) -> (i32, i32) {
    %c0_i32 = arith.constant 0 : i32
    %c0_i32_0 = arith.constant 0 : i32
    return %arg0, %c0_i32 : i32, i32
  }
}

</mosaic_0001>

<bundles_post_ra>
// kernel: qa_model_forward.1
= control target key start
LH: loop header
LB: loop body
LE: loop exit
PB: predicated region body
PF: predicated region fallthrough
CT: control target
= control target key end

     0   :  { %s5381_s0 = inlined_call_operand.hbm [shape: bf16[16,256,256], index: 0, kind: input, shape index: {}]   ;;  %s5382_s1 = inlined_call_operand.vmem [shape: bf16[16,256], index: 1, kind: input, shape index: {}]   ;;  %s5383_s2 = inlined_call_operand.vmem [shape: f32[16,1], index: 2, kind: input, shape index: {}]   ;;  %s5384_s3 = inlined_call_operand.hbm [shape: bf16[256,128], index: 3, kind: input, shape index: {}]   ;;  %s5385_s4 = inlined_call_operand.hbm [shape: f32[1,128], index: 4, kind: input, shape index: {}]   ;;  %s5386_s5 = inlined_call_operand.vmem [shape: bf16[128,32], index: 5, kind: input, shape index: {}]   ;;  %s5387_s6 = inlined_call_operand.hbm [shape: f32[1,32], index: 6, kind: input, shape index: {}]   ;;  %s5388_s7 = inlined_call_operand.hbm [shape: bf16[32,128], index: 7, kind: input, shape index: {}]   ;;  %s5389_s8 = inlined_call_operand.hbm [shape: f32[1,128], index: 8, kind: input, shape index: {}]   ;;  %s5390_s9 = inlined_call_operand.vmem [shape: f32[16,128], index: 9, kind: output, shape index: {}]  }
   0x1   :  { %5396 = sst [smem:[#allocation17_spill]] %s5383_s2 }
   0x2   :  { %5397 = sst [smem:[#allocation18_spill]] %s5386_s5 }
   0x3   :  { %5398 = sst [smem:[#allocation19_spill]] %s5390_s9 }
   0x4   :  { %14 = vsyncpa [#allocation4], 0 }
   0x5   :  { %16 = vsyncpa [#allocation4 + $0x1], 0 }
   0x6   :  { %17 = vsyncpa [#allocation6], 0 }
   0x7   :  { %18 = vsyncpa [#allocation9], 0 }
   0x8   :  { %19 = vsyncpa [#allocation12], 0  ;;  %s4622_s30 = smov 0   ;;  %s4624_s10 = smov 0  }
   0x9   :  { %s4626_s11 = smov 0   ;;  %s4628_s12 = smov 0  }
   0xa   :  { %s4630_s13 = smov 0   ;;  %s4632_s14 = smov 0  }
   0xb LB: > { %s3417_s15 = sadd.s32 4294967295, %s4556_s14   ;;  %p3419_p0 = scmp.ge.s32.totalorder %s4556_s14, 1  ;;  %s4556_s14 = sphi %s4632_s14, %s25_s14   ;;  %s4552_s13 = sphi %s4630_s13, %s5419_s13   ;;  %s4548_s12 = sphi %s4628_s12, %s5418_s12   ;;  %s4544_s11 = sphi %s4626_s11, %s5417_s11   ;;  %s4540_s10 = sphi %s4624_s10, %s5416_s10   ;;  %s4536_s30 = sphi %s4622_s30, %s5415_s30  }
   0xc   : > { %p4654_p1 = scmp.eq.s32.totalorder %s3417_s15, 0  ;;  %p276_p2 = scmp.lt.s32.totalorder %s4556_s14, 3 }
   0xd   : > { %s4558_s18 = smov [#allocation5]   ;;  %s4559_s21 = smov [#allocation8]  }
   0xe   : > { %s5399_s16 = scalar_select %p4654_p1, 1, 0 }
   0xf   : > { %p4659_p3 = pnand %p3419_p0, %p276_p2  ;;  %s288_s19 = sshll.u32 %s4558_s18, 4  ;;  %s4663_s19 = int_to_ptr.vmem [resolvable:$true] %s288_s19 }
  0x10   : > { %s316_s22 = sshll.u32 %s4559_s21, 4  ;;  %s4560_s23 = smov [#allocation7]   ;;  %s4673_s22 = int_to_ptr.vmem [resolvable:$true] %s316_s22 }
  0x11   : > { %s5400_s17 = scalar_select %p4659_p3, 1, 0 }
  0x12   : > { %p3821_p4 = pneg %p4659_p3  ;;  %s4675_s24 = sshll.u32 %s4560_s23, 4  ;;  %s303_s24 = int_to_ptr.vmem [resolvable:$true] %s4675_s24 }
  0x13   : > { %s4324_s27 = scalar_lea.hbm %s5384_s3, 2048 }
  0x14   : > { %p4669_p5 = pnand %p3821_p4, %p4654_p1  ;;  %p4325_p6 = scmp.ne.s32.totalorder %s5384_s3, %s4324_s27 }
  0x15   : > { %p4331_p10 = scmp.lt.u32.totalorder %s4324_s27, %s5384_s3 }
  0x16   : > { %p4685_p7 = pneg %p4669_p5 }
  0x18   : > { %p4327_p8 = pnand %p4685_p7, %p4325_p6 }
  0x1a   : > { %p4328_p9 = pneg %p4327_p8 }
  0x1c   : > { %p4333_p11 = pnand %p4331_p10, %p4328_p9 }
  0x1e   : > { %4336 = shalt.err (!%p4333_p11)
}
  0x1f   : > { %s4337_s23 = scalar_lea.vmem %s4663_s19, 2048  ;;  %p4345_p2 = scmp.lt.s32.totalorder %s4663_s19, %s4663_s19 }
  0x20   : > { %p4338_p12 = scmp.ne.s32.totalorder %s4663_s19, %s4337_s23  ;;  %p4346_p4 = scmp.lt.s32.totalorder %s4337_s23, %s4337_s23 }
  0x22   : > { %p4340_p13 = pnand %p4338_p12, %p4685_p7  ;;  %p4347_p6 = por %p4346_p4, %p4345_p2 }
  0x24   : > { %p4341_p0 = pneg %p4340_p13 }
  0x26   : > { %p4348_p8 = pnand %p4347_p6, %p4341_p0 }
  0x28   : > { %4351 = shalt.err (!%p4348_p8)
}
  0x29   : > { %s5395_s25 = smov 64   ;;  %s4562_s26 = smov 4  }
  0x2a   : > { %3824 = dma.hbm_to_vmem [thread:$0]  (!%p4669_p5), %s5384_s3, 2048, %s4663_s19, [#allocation6], %s5395_s25, %s5395_s25, %s4562_s26  }
  0x2b   : > { %s4352_s21 = scalar_lea.hbm %s5387_s6, 16 }
  0x2c   : > { %p4353_p9 = scmp.ne.s32.totalorder %s5387_s6, %s4352_s21  ;;  %p4359_p12 = scmp.lt.u32.totalorder %s4352_s21, %s5387_s6 }
  0x2e   : > { %p4355_p10 = pnand %p4353_p9, %p4685_p7 }
  0x30   : > { %p4356_p11 = pneg %p4355_p10 }
  0x32   : > { %p4361_p13 = pnand %p4359_p12, %p4356_p11 }
  0x34   : > { %4364 = shalt.err (!%p4361_p13)
}
  0x35   : > { %s4365_s19 = scalar_lea.vmem %s4673_s22, 16  ;;  %s4372_s9 = scalar_lea.vmem %s4673_s22, 32 }
  0x36   : > { %p4366_p0 = scmp.ne.s32.totalorder %s4673_s22, %s4365_s19  ;;  %p4373_p6 = scmp.lt.s32.totalorder %s4673_s22, %s4673_s22 }
  0x37   : > { %p4374_p8 = scmp.lt.s32.totalorder %s4372_s9, %s4365_s19 }
  0x38   : > { %p4368_p2 = pnand %p4366_p0, %p4685_p7 }
  0x39   : > { %p4375_p9 = por %p4374_p8, %p4373_p6 }
  0x3a   : > { %p4369_p4 = pneg %p4368_p2 }
  0x3c   : > { %p4376_p10 = pnand %p4375_p9, %p4369_p4 }
  0x3e   : > { %4379 = shalt.err (!%p4376_p10)
}
  0x3f   : > { %3830 = dma.hbm_to_vmem [thread:$0]  (!%p4669_p5), %s5387_s6, 16, %s4673_s22, [#allocation9]  }
  0x40   : > { %s4380_s29 = scalar_lea.hbm %s5385_s4, 16 }
  0x41   : > { %p4381_p11 = scmp.ne.s32.totalorder %s5385_s4, %s4380_s29  ;;  %p4387_p0 = scmp.lt.u32.totalorder %s4380_s29, %s5385_s4 }
  0x43   : > { %p4383_p12 = pnand %p4381_p11, %p4685_p7 }
  0x45   : > { %p4384_p13 = pneg %p4383_p12 }
  0x47   : > { %p4389_p2 = pnand %p4387_p0, %p4384_p13 }
  0x49   : > { %4392 = shalt.err (!%p4389_p2)
}
  0x4a   : > { %s4393_s9 = scalar_lea.vmem %s303_s24, 16  ;;  %s4400_s22 = scalar_lea.vmem %s303_s24, 32 }
  0x4b   : > { %p4394_p4 = scmp.ne.s32.totalorder %s303_s24, %s4393_s9  ;;  %p4401_p9 = scmp.lt.s32.totalorder %s303_s24, %s303_s24 }
  0x4c   : > { %p4402_p10 = scmp.lt.s32.totalorder %s4400_s22, %s4393_s9 }
  0x4d   : > { %p4396_p6 = pnand %p4394_p4, %p4685_p7 }
  0x4e   : > { %p4403_p3 = por %p4402_p10, %p4401_p9 }
  0x4f   : > { %p4397_p8 = pneg %p4396_p6 }
  0x51   : > { %p4404_p1 = pnand %p4403_p3, %p4397_p8 }
  0x53   : > { %4407 = shalt.err (!%p4404_p1)
}
  0x54   : > { %3827 = dma.hbm_to_vmem [thread:$0]  (!%p4669_p5), %s5385_s4, 16, %s303_s24, [#allocation6]  }
  0x55   : > { %s4563_s27 = smov [#allocation10]   ;;  %s4564_s29 = smov [#allocation11]  }
  0x56   : > { %s326_s28 = sshll.u32 %s4563_s27, 4  ;;  %s340_s18 = sshll.u32 %s4564_s29, 4  ;;  %s327_s28 = int_to_ptr.vmem [resolvable:$true] %s326_s28  ;;  %s341_s18 = int_to_ptr.vmem [resolvable:$true] %s340_s18 }
  0x57   : > { %s4408_s19 = scalar_lea.hbm %s5388_s7, 256 }
  0x58   : > { %p4409_p1 = scmp.ne.s32.totalorder %s5388_s7, %s4408_s19  ;;  %p4415_p12 = scmp.lt.u32.totalorder %s4408_s19, %s5388_s7 }
  0x5a   : > { %p4411_p3 = pnand %p4409_p1, %p4685_p7 }
  0x5c   : > { %p4412_p11 = pneg %p4411_p3 }
  0x5e   : > { %p4417_p13 = pnand %p4415_p12, %p4412_p11 }
  0x60   : > { %4420 = shalt.err (!%p4417_p13)
}
  0x61   : > { %s4421_s24 = scalar_lea.vmem %s327_s28, 256  ;;  %p4429_p6 = scmp.lt.s32.totalorder %s327_s28, %s327_s28 }
  0x62   : > { %p4422_p0 = scmp.ne.s32.totalorder %s327_s28, %s4421_s24  ;;  %p4430_p8 = scmp.lt.s32.totalorder %s4421_s24, %s4421_s24 }
  0x64   : > { %p4424_p2 = pnand %p4422_p0, %p4685_p7  ;;  %p4431_p9 = por %p4430_p8, %p4429_p6 }
  0x66   : > { %p4425_p4 = pneg %p4424_p2 }
  0x68   : > { %p4432_p10 = pnand %p4431_p9, %p4425_p4 }
  0x6a   : > { %4435 = shalt.err (!%p4432_p10)
}
  0x6b   : > { %s5403_s5 = smov 64   ;;  %s4436_s23 = scalar_lea.hbm %s5389_s8, 16 }
  0x6c   : > { %3833 = dma.hbm_to_vmem [thread:$0]  (!%p4669_p5), %s5388_s7, 256, %s327_s28, [#allocation9], %s5403_s5, %s5403_s5, %s4562_s26  }
  0x6d   : > { %p4437_p1 = scmp.ne.s32.totalorder %s5389_s8, %s4436_s23  ;;  %p4443_p12 = scmp.lt.u32.totalorder %s4436_s23, %s5389_s8 }
  0x6f   : > { %p4439_p3 = pnand %p4437_p1, %p4685_p7 }
  0x71   : > { %p4440_p11 = pneg %p4439_p3 }
  0x73   : > { %p4445_p13 = pnand %p4443_p12, %p4440_p11 }
  0x75   : > { %4448 = shalt.err (!%p4445_p13)
}
  0x76   : > { %s4449_s24 = scalar_lea.vmem %s341_s18, 16  ;;  %s4456_s26 = scalar_lea.vmem %s341_s18, 32 }
  0x77   : > { %p4450_p0 = scmp.ne.s32.totalorder %s341_s18, %s4449_s24  ;;  %p4457_p6 = scmp.lt.s32.totalorder %s341_s18, %s341_s18 }
  0x78   : > { %p4458_p8 = scmp.lt.s32.totalorder %s4456_s26, %s4449_s24 }
  0x79   : > { %p4452_p2 = pnand %p4450_p0, %p4685_p7 }
  0x7a   : > { %p4459_p9 = por %p4458_p8, %p4457_p6 }
  0x7b   : > { %p4453_p4 = pneg %p4452_p2 }
  0x7d   : > { %p4460_p10 = pnand %p4459_p9, %p4453_p4 }
  0x7f   : > { %4463 = shalt.err (!%p4460_p10)
}
  0x80   : > { %3836 = dma.hbm_to_vmem [thread:$0]  (!%p4669_p5), %s5389_s8, 16, %s341_s18, [#allocation12]  }
  0x81   : > { %s37_s15 = sadd.s32 1, %s4552_s13  ;;  %s46_s20 = sadd.s32 1, %s4544_s11 }
  0x82   : > { %p39_p7 = scmp.ge.s32.totalorder %s37_s15, 2  ;;  %p53_p1 = scmp.ne.s32.totalorder %s4544_s11, %s4540_s10 }
  0x83   : > { %p54_p3 = scmp.eq.s32.totalorder %s4556_s14, 0  ;;  %p59_p12 = scmp.ne.s32.totalorder %s4540_s10, %s4536_s30 }
  0x84   : > { %s5421_s15 = smov (%p39_p7, %s37_s15), 0  ;;  %p3846_p13 = scmp.lt.s32.totalorder %s4556_s14, 2 }
  0x85   : > { %p4798_p11 = por %p54_p3, %p53_p1  ;;  %s41_s27 = ssub.s32 %s4552_s13, %s5421_s15 }
  0x86   : > { %p44_p0 = scmp.eq.s32.totalorder %s41_s27, 0  ;;  %p5405_p2 = scmp.ne.s32.totalorder %s5399_s16, 0 }
  0x87   : > { %s351_s29 = sand.u32 1, %s4544_s11   ;;  %s3735_s21 = sshll.u32 %s4552_s13, 15 }
  0x88   : > { %p4809_p4 = por %p5405_p2, %p59_p12  ;;  %s3426_s19 = sshll.u32 %s351_s29, 11 }
  0x89   : > { %s4816_s23 = scalar_select %p44_p0, %s4544_s11, %s46_s20  }
  0x8a   : > { %s4821_s2 = scalar_lea.hbm %s5381_s0, %s3735_s21  ;;  %s355_s30 = scalar_lea.vmem [#allocation3], %s3426_s19 }
  0x8b   : > { %s366_s24 = sshll.u32 %s355_s30, 4  ;;  %p4825_p5 = pnand %p3846_p13, %p4798_p11  ;;  %s4829_s24 = int_to_ptr.vmem [resolvable:$true] %s366_s24 }
  0x8c   : > { %s4831_s28 = scalar_lea.sflag [#allocation4], %s351_s29  ;;  %s4464_s5 = scalar_lea.hbm %s4821_s2, 32768 }
  0x8d   : > { %p4465_p6 = scmp.ne.s32.totalorder %s4821_s2, %s4464_s5  ;;  %p4466_p8 = pneg %p4825_p5 }
  0x8e   : > { %s4469_s27 = scalar_lea.hbm %s5381_s0, 65536  ;;  %p4470_p7 = scmp.lt.u32.totalorder %s4821_s2, %s5381_s0 }
  0x8f   : > { %p4467_p9 = pnand %p4466_p8, %p4465_p6  ;;  %p4471_p1 = scmp.lt.u32.totalorder %s4469_s27, %s4464_s5 }
  0x90   : > { %p4473_p11 = scmp.lt.u32.totalorder %s4464_s5, %s4821_s2 }
  0x91   : > { %p4468_p10 = pneg %p4467_p9  ;;  %p4472_p3 = por %p4471_p1, %p4470_p7 }
  0x93   : > { %p4474_p12 = por %p4473_p11, %p4472_p3 }
  0x95   : > { %p4475_p13 = pnand %p4474_p12, %p4468_p10 }
  0x97   : > { %4478 = shalt.err (!%p4475_p13)
}
  0x98   : > { %s4479_s29 = scalar_lea.vmem %s4829_s24, 32768  ;;  %s4565_s9 = smov [#allocation3]  }
  0x99   : > { %p4480_p0 = scmp.ne.s32.totalorder %s4829_s24, %s4479_s29  ;;  %s4484_s22 = sshll.u32 %s4565_s9, 4  ;;  %s4485_s22 = int_to_ptr.vmem [resolvable:$false] %s4484_s22 }
  0x9a   : > { %s4486_s30 = scalar_lea.vmem %s4485_s22, 65536  ;;  %p4487_p9 = scmp.lt.s32.totalorder %s4829_s24, %s4485_s22 }
  0x9b   : > { %p4482_p2 = pnand %p4480_p0, %p4466_p8  ;;  %p4488_p7 = scmp.lt.s32.totalorder %s4486_s30, %s4479_s29 }
  0x9d   : > { %p4483_p6 = pneg %p4482_p2  ;;  %p4489_p1 = por %p4488_p7, %p4487_p9 }
  0x9f   : > { %p4490_p3 = pnand %p4489_p1, %p4483_p6 }
  0xa1   : > { %4493 = shalt.err (!%p4490_p3)
}
  0xa2   : > { %s4566_s5 = smov 128   ;;  %s4567_s20 = smov 8  }
  0xa3   : > { %3840 = dma.hbm_to_vmem [thread:$0]  (!%p4825_p5), %s4821_s2, 32768, %s4829_s24, %s4831_s28, %s4566_s5, %s4566_s5, %s4567_s20  }
  0xa4   : > { %p5408_p8 = scmp.ne.s32.totalorder %s5400_s17, 0 }
  0xa5   : > { %s400_s25 = sand.u32 (!%p5408_p8), 1, %s4540_s10  }
  0xa6   : > { %398 = sbr.rel (%p5408_p8) target bundleno = 1336 (0x538), region = 56  ;;  %s3431_s27 = sshll.u32 (!%p5408_p8), %s400_s25, 11 }
  0xa7   : > { %s401_s21 = scalar_lea.sflag (!%p5408_p8), [#allocation4], %s400_s25  ;;  %s4862_s19 = scalar_lea.vmem (!%p5408_p8), [#allocation3], %s3431_s27 }
  0xad   : > { %4519 = dma.done.wait (%p4809_p4), %s401_s21, 32768  }
  0xae   : > { %4521 = vsyncadd (%p4809_p4), %s401_s21, 4294934528  ;;  %p5409_p10 = scmp.ne.s32.totalorder %s5399_s16, 0 }
  0xb0   : > { %4523 = dma.done.wait (%p5409_p10), [#allocation6], 2064  }
  0xb1   : > { %4525 = vsyncadd (%p5409_p10), [#allocation6], 4294965232 }
  0xb2   : > { %4527 = dma.done.wait (%p5409_p10), [#allocation9], 272  }
  0xb3   : > { %4529 = vsyncadd (%p5409_p10), [#allocation9], 4294967024 }
  0xb4   : > { %4531 = dma.done.wait (%p5409_p10), [#allocation12], 16  }
  0xb5   : > { %4533 = vsyncadd (%p5409_p10), [#allocation12], 4294967280  ;;  %v3914_v0 = vld [vmem:[%s4862_s19 + $0x4] ss:$8 sps:$4 sm:$0xff]   ;;  %v3918_v2 = vld [vmem:[%s4862_s19] ss:$8 sps:$4 sm:$0xff]   ;;  %v496_v36 = vlaneseq }
  0xb6   : > { %v3916_v1 = vld [vmem:[%s4862_s19 + $0x104] ss:$8 sps:$4 sm:$0xff]   ;;  %977 = vmatprep.subr.bf16.mxu0 %v3914_v0  ;;  %v3919_v3 = vld [vmem:[%s4862_s19 + $0x100] ss:$8 sps:$4 sm:$0xff]   ;;  %v3920_v4 = vld [vmem:[%s4862_s19 + $0x14] ss:$8 sps:$4 sm:$0xff]  }
  0xb7   : > { %1189 = vmatprep.subr.bf16.mxu1 %v3916_v1  ;;  %978 = vmatpush1.bf16.msra.mxu0 %v3918_v2  ;;  %v3922_v5 = vld [vmem:[%s4862_s19 + $0x114] ss:$8 sps:$4 sm:$0xff]   ;;  %v3924_v6 = vld [vmem:[%s4862_s19 + $0x10] ss:$8 sps:$4 sm:$0xff]   ;;  %v3926_v8 = vld [vmem:[%s4862_s19 + $0x24] ss:$8 sps:$4 sm:$0xff]  }
  0xb8   : > { %1190 = vmatpush1.bf16.msra.mxu1 %v3919_v3  ;;  %979 = vmatprep.subr.bf16.mxu0 %v3920_v4  ;;  %v3925_v7 = vld [vmem:[%s4862_s19 + $0x110] ss:$8 sps:$4 sm:$0xff]   ;;  %v3928_v9 = vld [vmem:[%s4862_s19 + $0x124] ss:$8 sps:$4 sm:$0xff]   ;;  %v3930_v10 = vld [vmem:[%s4862_s19 + $0x20] ss:$8 sps:$4 sm:$0xff]  }
  0xb9   : > { %1191 = vmatprep.subr.bf16.mxu1 %v3922_v5  ;;  %v3931_v11 = vld [vmem:[%s4862_s19 + $0x120] ss:$8 sps:$4 sm:$0xff]   ;;  %v3932_v12 = vld [vmem:[%s4862_s19 + $0x34] ss:$8 sps:$4 sm:$0xff]   ;;  %v3936_v14 = vld [vmem:[%s4862_s19 + $0x30] ss:$8 sps:$4 sm:$0xff]  }
  0xba   : > { %v3934_v13 = vld [vmem:[%s4862_s19 + $0x134] ss:$8 sps:$4 sm:$0xff]   ;;  %v3937_v15 = vld [vmem:[%s4862_s19 + $0x130] ss:$8 sps:$4 sm:$0xff]   ;;  %v3938_v16 = vld [vmem:[%s4862_s19 + $0x44] ss:$8 sps:$4 sm:$0xff]  }
  0xbb   : > { %980 = vmatpush1.bf16.msra.mxu0 %v3924_v6  ;;  %v3940_v17 = vld [vmem:[%s4862_s19 + $0x144] ss:$8 sps:$4 sm:$0xff]   ;;  %v3942_v18 = vld [vmem:[%s4862_s19 + $0x40] ss:$8 sps:$4 sm:$0xff]   ;;  %v3944_v20 = vld [vmem:[%s4862_s19 + $0x54] ss:$8 sps:$4 sm:$0xff]  }
  0xbc   : > { %1192 = vmatpush1.bf16.msra.mxu1 %v3925_v7  ;;  %981 = vmatprep.subr.bf16.mxu0 %v3926_v8  ;;  %v3943_v19 = vld [vmem:[%s4862_s19 + $0x140] ss:$8 sps:$4 sm:$0xff]   ;;  %v3946_v21 = vld [vmem:[%s4862_s19 + $0x154] ss:$8 sps:$4 sm:$0xff]   ;;  %v3948_v22 = vld [vmem:[%s4862_s19 + $0x50] ss:$8 sps:$4 sm:$0xff]  }
  0xbd   : > { %1193 = vmatprep.subr.bf16.mxu1 %v3928_v9  ;;  %v3949_v23 = vld [vmem:[%s4862_s19 + $0x150] ss:$8 sps:$4 sm:$0xff]   ;;  %v3950_v24 = vld [vmem:[%s4862_s19 + $0x64] ss:$8 sps:$4 sm:$0xff]   ;;  %v3954_v26 = vld [vmem:[%s4862_s19 + $0x60] ss:$8 sps:$4 sm:$0xff]  }
  0xbe   : > { %v3952_v25 = vld [vmem:[%s4862_s19 + $0x164] ss:$8 sps:$4 sm:$0xff]   ;;  %v3955_v27 = vld [vmem:[%s4862_s19 + $0x160] ss:$8 sps:$4 sm:$0xff]   ;;  %v3956_v28 = vld [vmem:[%s4862_s19 + $0x74] ss:$8 sps:$4 sm:$0xff]  }
  0xbf   : > { %982 = vmatpush1.bf16.msra.mxu0 %v3930_v10  ;;  %v3958_v29 = vld [vmem:[%s4862_s19 + $0x174] ss:$8 sps:$4 sm:$0xff]   ;;  %v3960_v30 = vld [vmem:[%s4862_s19 + $0x70] ss:$8 sps:$4 sm:$0xff]   ;;  %v3962_v32 = vld [vmem:[%s4862_s19 + $0x84] ss:$8 sps:$4 sm:$0xff]  }
  0xc0   : > { %1194 = vmatpush1.bf16.msra.mxu1 %v3931_v11  ;;  %983 = vmatprep.subr.bf16.mxu0 %v3932_v12  ;;  %v3961_v31 = vld [vmem:[%s4862_s19 + $0x170] ss:$8 sps:$4 sm:$0xff]   ;;  %p474_p4 = scmp.lt.s32.totalorder %s4548_s12, 1  ;;  %v3964_v33 = vld [vmem:[%s4862_s19 + $0x184] ss:$8 sps:$4 sm:$0xff]   ;;  %v4924_v42 = vshrl.u32 %v496_v36, 7 }
  0xc1   : > { %1195 = vmatprep.subr.bf16.mxu1 %v3934_v13  ;;  %v3966_v34 = vld [vmem:[%s4862_s19 + $0x80] ss:$8 sps:$4 sm:$0xff]   ;;  %v3968_v37 = vld [vmem:[%s4862_s19 + $0x94] ss:$8 sps:$4 sm:$0xff]   ;;  %v4568_v38 = vmov 1966171168  }
  0xc2   : > { %v3967_v35 = vld [vmem:[%s4862_s19 + $0x180] ss:$8 sps:$4 sm:$0xff]   ;;  %v519_v39 = vunpack.c.l.s4 %v4568_v38  ;;  %v3970_v40 = vld [vmem:[%s4862_s19 + $0x194] ss:$8 sps:$4 sm:$0xff]   ;;  %s5423_s12 = smov (!%p474_p4, %s4548_s12), 1  ;;  %v4569_v47 = vmov 0  }
  0xc3   : > { %984 = vmatpush1.bf16.msra.mxu0 %v3936_v14  ;;  %v3972_v41 = vld [vmem:[%s4862_s19 + $0x90] ss:$8 sps:$4 sm:$0xff]   ;;  %v3974_v44 = vld [vmem:[%s4862_s19 + $0xa4] ss:$8 sps:$4 sm:$0xff]   ;;  %s4929_s16 = sshll.u32 %s5423_s12, 3  ;;  %3913 = vset.pattern.permute.xlu0 %v4569_v47  ;;  %v4948_v57 = vsub.s32 1, %v4924_v42 }
  0xc4   : > { %1196 = vmatpush1.bf16.msra.mxu1 %v3937_v15  ;;  %985 = vmatprep.subr.bf16.mxu0 %v3938_v16  ;;  %v3973_v43 = vld [vmem:[%s4862_s19 + $0x190] ss:$8 sps:$4 sm:$0xff]   ;;  %v520_v45 = vunpack.c.0.s8 %v519_v39  ;;  %v3976_v46 = vld [vmem:[%s4862_s19 + $0x1a4] ss:$8 sps:$4 sm:$0xff]   ;;  %v3978_v48 = vld [vmem:[%s4862_s19 + $0xa0] ss:$8 sps:$4 sm:$0xff]   ;;  %s481_s2 = scalar_lea.vmem %s5382_s1, %s4929_s16 }
  0xc5   : > { %1197 = vmatprep.subr.bf16.mxu1 %v3940_v17  ;;  %v3979_v49 = vld [vmem:[%s4862_s19 + $0x1a0] ss:$8 sps:$4 sm:$0xff]   ;;  %v3980_v50 = vld [vmem:[%s4862_s19 + $0xb4] ss:$8 sps:$4 sm:$0xff]   ;;  %v3984_v53 = vld [vmem:[%s4862_s19 + $0xb0] ss:$8 sps:$4 sm:$0xff]  }
  0xc6   : > { %v4939_v51 = vsub.s32 %v520_v45, %v4924_v42  ;;  %v3982_v52 = vld [vmem:[%s4862_s19 + $0x1b4] ss:$8 sps:$4 sm:$0xff]   ;;  %v3985_v55 = vld [vmem:[%s4862_s19 + $0x1b0] ss:$8 sps:$4 sm:$0xff]   ;;  %v3986_v58 = vld [vmem:[%s4862_s19 + $0xc4] ss:$8 sps:$4 sm:$0xff]  }
  0xc7   : > { %986 = vmatpush1.bf16.msra.mxu0 %v3942_v18  ;;  %v3441_v54 = vld.sshfl [vmem:[%s481_s2] sm:$0xff pattern:$0x75316420]  ;;  %v3988_v59 = vld [vmem:[%s4862_s19 + $0x1c4] ss:$8 sps:$4 sm:$0xff]   ;;  %v4975_v17 = vsub.s32 0, %v4924_v42 }
  0xc8   : > { %1198 = vmatpush1.bf16.msra.mxu1 %v3943_v19  ;;  %987 = vmatprep.subr.bf16.mxu0 %v3944_v20  ;;  %v4945_v56 = vrot.slane %v3441_v54, %v4939_v51  ;;  %v3990_v62 = vld [vmem:[%s4862_s19 + $0xc0] ss:$8 sps:$4 sm:$0xff]   ;;  %v3992_v2 = vld [vmem:[%s4862_s19 + $0xd4] ss:$8 sps:$4 sm:$0xff]   ;;  %v517_v4 = vcombine.high %v3441_v54, %v3441_v54  ;;  %v3996_v6 = vld [vmem:[%s4862_s19 + $0xd0] ss:$8 sps:$4 sm:$0xff]  }
  0xc9   : > { %1199 = vmatprep.subr.bf16.mxu1 %v3946_v21  ;;  %v3991_v63 = vld [vmem:[%s4862_s19 + $0x1c0] ss:$8 sps:$4 sm:$0xff]   ;;  %v3994_v3 = vld [vmem:[%s4862_s19 + $0x1d4] ss:$8 sps:$4 sm:$0xff]   ;;  %v3997_v7 = vld [vmem:[%s4862_s19 + $0x1d0] ss:$8 sps:$4 sm:$0xff]  }
  0xca   : > { %v3442_v60 = vpack.i.b16 %v4945_v56, %v4945_v56  ;;  %v535_v61 = vunpack.i.h.s16 %v4945_v56  ;;  %v3998_v8 = vld [vmem:[%s4862_s19 + $0xe4] ss:$8 sps:$4 sm:$0xff]   ;;  %v4966_v10 = vrot.slane %v517_v4, %v4939_v51  ;;  %v4002_v11 = vld [vmem:[%s4862_s19 + $0xe0] ss:$8 sps:$4 sm:$0xff]   ;;  %v4004_v13 = vld [vmem:[%s4862_s19 + $0xf4] ss:$8 sps:$4 sm:$0xff]  }
  0xcb   : > { %988 = vmatpush1.bf16.msra.mxu0 %v3948_v22  ;;  %v4000_v9 = vld [vmem:[%s4862_s19 + $0x1e4] ss:$8 sps:$4 sm:$0xff]   ;;  %v4003_v12 = vld [vmem:[%s4862_s19 + $0x1e0] ss:$8 sps:$4 sm:$0xff]   ;;  %v4006_v14 = vld [vmem:[%s4862_s19 + $0x1f4] ss:$8 sps:$4 sm:$0xff]  }
  0xcc   : > { %1200 = vmatpush1.bf16.msra.mxu1 %v3949_v23  ;;  %989 = vmatprep.subr.bf16.mxu0 %v3950_v24  ;;  %v814_v0 = vrot.slane %v3442_v60, %v4948_v57  ;;  %v1018_v1 = vpack.i.b16 %v535_v61, %v535_v61  ;;  %v537_v15 = vunpack.i.h.s16 %v4966_v10  ;;  %v4008_v16 = vld [vmem:[%s4862_s19 + $0xf0] ss:$8 sps:$4 sm:$0xff]   ;;  %v4012_v19 = vld [vmem:[%s4862_s19 + $0x204] ss:$8 sps:$4 sm:$0xff]   ;;  %v4982_v21 = vpack.i.b16 %v4966_v10, %v4966_v10  ;;  %v4030_v38 = vld [vmem:[%s4862_s19 + $0x234] ss:$8 sps:$4 sm:$0xff]  }
  0xcd   : > { %1201 = vmatprep.subr.bf16.mxu1 %v3952_v25  ;;  %v4009_v18 = vld [vmem:[%s4862_s19 + $0x1f0] ss:$8 sps:$4 sm:$0xff]   ;;  %v4015_v20 = vld [vmem:[%s4862_s19 + $0x304] ss:$8 sps:$4 sm:$0xff]   ;;  %v810_v23 = vrot.slane %v3442_v60, %v4975_v17  ;;  %v4010_v25 = vld [vmem:[%s4862_s19 + $0x200] ss:$8 sps:$4 sm:$0xff]  }
  0xce   : > { %1009 = vmatprep.mubr.bf16.mxu0 %v814_v0  ;;  %v1026_v5 = vrot.slane %v1018_v1, %v4948_v57  ;;  %v4984_v22 = vpack.i.b16 %v537_v15, %v537_v15  ;;  %v1022_v24 = vrot.slane %v1018_v1, %v4975_v17  ;;  %v4033_v39 = vld [vmem:[%s4862_s19 + $0x334] ss:$8 sps:$4 sm:$0xff]   ;;  %v4034_v45 = vld [vmem:[%s4862_s19 + $0x240] ss:$8 sps:$4 sm:$0xff]   ;;  %v4052_v60 = vld [vmem:[%s4862_s19 + $0x270] ss:$8 sps:$4 sm:$0xff]  }
  0xcf   : > { %990 = vmatpush1.bf16.msra.mxu0 %v3954_v26  ;;  %v4013_v26 = vld [vmem:[%s4862_s19 + $0x300] ss:$8 sps:$4 sm:$0xff]   ;;  %v4042_v47 = vld [vmem:[%s4862_s19 + $0x254] ss:$8 sps:$4 sm:$0xff]   ;;  %v4055_v61 = vld [vmem:[%s4862_s19 + $0x370] ss:$8 sps:$4 sm:$0xff]  }
  0xd0   : > { %1202 = vmatpush1.bf16.msra.mxu1 %v3955_v27  ;;  %991 = vmatprep.subr.bf16.mxu0 %v3956_v28  ;;  %v4018_v27 = vld [vmem:[%s4862_s19 + $0x214] ss:$8 sps:$4 sm:$0xff]   ;;  %v4046_v54 = vld [vmem:[%s4862_s19 + $0x260] ss:$8 sps:$4 sm:$0xff]   ;;  %v4064_v4 = vld [vmem:[%s4862_s19 + $0x290] ss:$8 sps:$4 sm:$0xff]  }
  0xd1   : > { %1203 = vmatprep.subr.bf16.mxu1 %v3958_v29  ;;  %1221 = vmatprep.mubr.bf16.mxu1 %v1026_v5  ;;  %v4021_v28 = vld [vmem:[%s4862_s19 + $0x314] ss:$8 sps:$4 sm:$0xff]   ;;  %v1238_v29 = vrot.slane %v4982_v21, %v4948_v57  ;;  %v4058_v0 = vld [vmem:[%s4862_s19 + $0x280] ss:$8 sps:$4 sm:$0xff]   ;;  %v4067_v5 = vld [vmem:[%s4862_s19 + $0x390] ss:$8 sps:$4 sm:$0xff]  }
  0xd2   : > { %v4061_v1 = vld [vmem:[%s4862_s19 + $0x380] ss:$8 sps:$4 sm:$0xff]   ;;  %s5410_s26 = sld [smem:[#allocation17_spill]]  ;;  %v4084_v15 = vld [vmem:[%s4862_s19 + $0x2c4] ss:$8 sps:$4 sm:$0xff]   ;;  %vm5099_vm0 = vcmp.lt.s32.totalorder %v496_v36, 256 }
  0xd3   : > { %992 = vmatpush1.bf16.msra.mxu0 %v3960_v30  ;;  %v1450_v30 = vrot.slane %v4984_v22, %v4948_v57  ;;  %v4142_v36 = vld [vmem:[%s4862_s19 + $0x460] ss:$8 sps:$4 sm:$0xff]   ;;  %s5413_s22 = sld [smem:[#allocation18_spill]]  ;;  %vm2906_vm1 = vcmask 1041409   ;;  %vm2909_vm2 = vcmask 1042434   ;;  %vm2912_vm3 = vcmask 1043459  }
  0xd4   : > { %1204 = vmatpush1.bf16.msra.mxu1 %v3961_v31  ;;  %993 = vmatprep.subr.bf16.mxu0 %v3962_v32  ;;  %v4016_v31 = vld [vmem:[%s4862_s19 + $0x210] ss:$8 sps:$4 sm:$0xff]   ;;  %vm2915_vm4 = vcmask 1044484   ;;  %vm2918_vm5 = vcmask 1045509   ;;  %vm2921_vm6 = vcmask 1046534   ;;  %vm2924_vm7 = vcmask 1047559  }
  0xd5   : > { %1205 = vmatprep.subr.bf16.mxu1 %v3964_v33  ;;  %v4019_v32 = vld [vmem:[%s4862_s19 + $0x310] ss:$8 sps:$4 sm:$0xff]   ;;  %v4024_v33 = vld [vmem:[%s4862_s19 + $0x224] ss:$8 sps:$4 sm:$0xff]   ;;  %vm4571_vm8 = vmmov 0   ;;  %vm3218_vm9 = vcmask 261120  }
  0xd6   : > { %s5414_s30 = sld [smem:[#allocation19_spill]] }
  0xd7   : > { %994 = vmatpush1.bf16.msra.mxu0 %v3966_v34  ;;  %v4027_v34 = vld [vmem:[%s4862_s19 + $0x324] ss:$8 sps:$4 sm:$0xff]  }
  0xd8   : > { %1206 = vmatpush1.bf16.msra.mxu1 %v3967_v35  ;;  %995 = vmatprep.subr.bf16.mxu0 %v3968_v37  ;;  %v4022_v35 = vld [vmem:[%s4862_s19 + $0x220] ss:$8 sps:$4 sm:$0xff]   ;;  %s486_s28 = scalar_lea.vmem %s5410_s26, %s4929_s16 }
  0xd9   : > { %1207 = vmatprep.subr.bf16.mxu1 %v3970_v40  ;;  %v4025_v37 = vld [vmem:[%s4862_s19 + $0x320] ss:$8 sps:$4 sm:$0xff]   ;;  %v4028_v40 = vld [vmem:[%s4862_s19 + $0x230] ss:$8 sps:$4 sm:$0xff]  }
  0xdb   : > { %996 = vmatpush1.bf16.msra.mxu0 %v3972_v41  ;;  %v4031_v41 = vld [vmem:[%s4862_s19 + $0x330] ss:$8 sps:$4 sm:$0xff]  }
  0xdc   : > { %1208 = vmatpush1.bf16.msra.mxu1 %v3973_v43  ;;  %997 = vmatprep.subr.bf16.mxu0 %v3974_v44  ;;  %v4036_v43 = vld [vmem:[%s4862_s19 + $0x244] ss:$8 sps:$4 sm:$0xff]   ;;  %s490_s5 = scalar_lea.vmem %s5414_s30, %s4929_s16 }
  0xdd   : > { %1209 = vmatprep.subr.bf16.mxu1 %v3976_v46  ;;  %v4039_v44 = vld [vmem:[%s4862_s19 + $0x344] ss:$8 sps:$4 sm:$0xff]   ;;  %v4037_v46 = vld [vmem:[%s4862_s19 + $0x340] ss:$8 sps:$4 sm:$0xff]  }
  0xdf   : > { %998 = vmatpush1.bf16.msra.mxu0 %v3978_v48  ;;  %v4045_v48 = vld [vmem:[%s4862_s19 + $0x354] ss:$8 sps:$4 sm:$0xff]  }
  0xe0   : > { %1210 = vmatpush1.bf16.msra.mxu1 %v3979_v49  ;;  %999 = vmatprep.subr.bf16.mxu0 %v3980_v50  ;;  %v4040_v49 = vld [vmem:[%s4862_s19 + $0x250] ss:$8 sps:$4 sm:$0xff]  }
  0xe1   : > { %1211 = vmatprep.subr.bf16.mxu1 %v3982_v52  ;;  %v4043_v50 = vld [vmem:[%s4862_s19 + $0x350] ss:$8 sps:$4 sm:$0xff]   ;;  %v4048_v52 = vld [vmem:[%s4862_s19 + $0x264] ss:$8 sps:$4 sm:$0xff]  }
  0xe3   : > { %1000 = vmatpush1.bf16.msra.mxu0 %v3984_v53  ;;  %v4051_v53 = vld [vmem:[%s4862_s19 + $0x364] ss:$8 sps:$4 sm:$0xff]  }
  0xe4   : > { %1212 = vmatpush1.bf16.msra.mxu1 %v3985_v55  ;;  %1001 = vmatprep.subr.bf16.mxu0 %v3986_v58  ;;  %v4049_v55 = vld [vmem:[%s4862_s19 + $0x360] ss:$8 sps:$4 sm:$0xff]   ;;  %v4054_v58 = vld [vmem:[%s4862_s19 + $0x274] ss:$8 sps:$4 sm:$0xff]  }
  0xe5   : > { %1213 = vmatprep.subr.bf16.mxu1 %v3988_v59  ;;  %v4057_v59 = vld [vmem:[%s4862_s19 + $0x374] ss:$8 sps:$4 sm:$0xff]  }
  0xe7   : > { %1002 = vmatpush1.bf16.msra.mxu0 %v3990_v62  ;;  %v4060_v62 = vld [vmem:[%s4862_s19 + $0x284] ss:$8 sps:$4 sm:$0xff]  }
  0xe8   : > { %1214 = vmatpush1.bf16.msra.mxu1 %v3991_v63  ;;  %1003 = vmatprep.subr.bf16.mxu0 %v3992_v2  ;;  %v4063_v63 = vld [vmem:[%s4862_s19 + $0x384] ss:$8 sps:$4 sm:$0xff]   ;;  %v4066_v2 = vld [vmem:[%s4862_s19 + $0x294] ss:$8 sps:$4 sm:$0xff]  }
  0xe9   : > { %1215 = vmatprep.subr.bf16.mxu1 %v3994_v3  ;;  %v4069_v3 = vld [vmem:[%s4862_s19 + $0x394] ss:$8 sps:$4 sm:$0xff]  }
  0xeb   : > { %1004 = vmatpush1.bf16.msra.mxu0 %v3996_v6  ;;  %v4072_v6 = vld [vmem:[%s4862_s19 + $0x2a4] ss:$8 sps:$4 sm:$0xff]  }
  0xec   : > { %1216 = vmatpush1.bf16.msra.mxu1 %v3997_v7  ;;  %1005 = vmatprep.subr.bf16.mxu0 %v3998_v8  ;;  %v4075_v7 = vld [vmem:[%s4862_s19 + $0x3a4] ss:$8 sps:$4 sm:$0xff]   ;;  %v4070_v8 = vld [vmem:[%s4862_s19 + $0x2a0] ss:$8 sps:$4 sm:$0xff]  }
  0xed   : > { %1217 = vmatprep.subr.bf16.mxu1 %v4000_v9  ;;  %v4073_v9 = vld [vmem:[%s4862_s19 + $0x3a0] ss:$8 sps:$4 sm:$0xff]  }
  0xef   : > { %1006 = vmatpush1.bf16.msra.mxu0 %v4002_v11  ;;  %v4078_v11 = vld [vmem:[%s4862_s19 + $0x2b4] ss:$8 sps:$4 sm:$0xff]  }
  0xf0   : > { %1218 = vmatpush1.bf16.msra.mxu1 %v4003_v12  ;;  %1007 = vmatprep.subr.bf16.mxu0 %v4004_v13  ;;  %v4081_v12 = vld [vmem:[%s4862_s19 + $0x3b4] ss:$8 sps:$4 sm:$0xff]   ;;  %v4076_v13 = vld [vmem:[%s4862_s19 + $0x2b0] ss:$8 sps:$4 sm:$0xff]  }
  0xf1   : > { %1219 = vmatprep.subr.bf16.mxu1 %v4006_v14  ;;  %v4079_v14 = vld [vmem:[%s4862_s19 + $0x3b0] ss:$8 sps:$4 sm:$0xff]  }
  0xf3   : > { %1008 = vmatpush1.bf16.msra.mxu0 %v4008_v16  ;;  %v4087_v16 = vld [vmem:[%s4862_s19 + $0x3c4] ss:$8 sps:$4 sm:$0xff]  }
  0xf4   : > { %1220 = vmatpush1.bf16.msra.mxu1 %v4009_v18  ;;  %1401 = vmatprep.subr.bf16.mxu0 %v4012_v19  ;;  %v2677_v18 = vld [vmem:[%s486_s28] sm:$0xff]  ;;  %v4082_v19 = vld [vmem:[%s4862_s19 + $0x2c0] ss:$8 sps:$4 sm:$0xff]  }
  0xf5   : > { %1613 = vmatprep.subr.bf16.mxu1 %v4015_v20  ;;  %2680 = vperm.xlu0 %3913, %v2677_v18   ;;  %v4085_v20 = vld [vmem:[%s4862_s19 + $0x3c0] ss:$8 sps:$4 sm:$0xff]  }
  0xf6   : > { %1010 = vmatmul.mubr.bf16.vlgmr.msra.gmra.mrb[0].mxu0 %v810_v23  ;;  %v4090_v23 = vld [vmem:[%s4862_s19 + $0x2d4] ss:$8 sps:$4 sm:$0xff]   ;;  %v4154_v18 = vld [vmem:[%s4862_s19 + $0x480] ss:$8 sps:$4 sm:$0xff]  }
  0xf7   : > { %1222 = vmatmul.mubr.bf16.vlgmr.msra.gmra.mrb[0].mxu1 %v1022_v24  ;;  %1402 = vmatpush1.bf16.msra.mxu0 %v4010_v25  ;;  %v4093_v24 = vld [vmem:[%s4862_s19 + $0x3d4] ss:$8 sps:$4 sm:$0xff]   ;;  %v4088_v25 = vld [vmem:[%s4862_s19 + $0x2d0] ss:$8 sps:$4 sm:$0xff]  }
  0xf8   : > { %1614 = vmatpush1.bf16.msra.mxu1 %v4013_v26  ;;  %1403 = vmatprep.subr.bf16.mxu0 %v4018_v27  ;;  %v4091_v26 = vld [vmem:[%s4862_s19 + $0x3d0] ss:$8 sps:$4 sm:$0xff]   ;;  %v4096_v27 = vld [vmem:[%s4862_s19 + $0x2e4] ss:$8 sps:$4 sm:$0xff]  }
  0xf9   : > { %1615 = vmatprep.subr.bf16.mxu1 %v4021_v28  ;;  %1433 = vmatprep.mubr.bf16.mxu0 %v1238_v29  ;;  %v4099_v28 = vld [vmem:[%s4862_s19 + $0x3e4] ss:$8 sps:$4 sm:$0xff]   ;;  %v532_v29 = vcombine.high %v4945_v56, %v4945_v56 }
  0xfa   : > { %1645 = vmatprep.mubr.bf16.mxu1 %v1450_v30  ;;  %v4094_v30 = vld [vmem:[%s4862_s19 + $0x2e0] ss:$8 sps:$4 sm:$0xff]   ;;  %v4108_v56 = vld [vmem:[%s4862_s19 + $0x404] ss:$8 sps:$4 sm:$0xff]  }
  0xfb   : > { %1404 = vmatpush1.bf16.msra.mxu0 %v4016_v31  ;;  %v4097_v31 = vld [vmem:[%s4862_s19 + $0x3e0] ss:$8 sps:$4 sm:$0xff]  }
  0xfc   : > { %1616 = vmatpush1.bf16.msra.mxu1 %v4019_v32  ;;  %1405 = vmatprep.subr.bf16.mxu0 %v4024_v33  ;;  %v4102_v32 = vld [vmem:[%s4862_s19 + $0x2f4] ss:$8 sps:$4 sm:$0xff]  }
  0xfd   : > { %1617 = vmatprep.subr.bf16.mxu1 %v4027_v34  ;;  %v4105_v33 = vld [vmem:[%s4862_s19 + $0x3f4] ss:$8 sps:$4 sm:$0xff]   ;;  %v539_v34 = vunpack.i.h.s16 %v532_v29 }
  0xff   : > { %1406 = vmatpush1.bf16.msra.mxu0 %v4022_v35  ;;  %v4100_v35 = vld [vmem:[%s4862_s19 + $0x2f0] ss:$8 sps:$4 sm:$0xff]  }
 0x100   : > { %1618 = vmatpush1.bf16.msra.mxu1 %v4025_v37  ;;  %1407 = vmatprep.subr.bf16.mxu0 %v4030_v38  ;;  %v4103_v37 = vld [vmem:[%s4862_s19 + $0x3f0] ss:$8 sps:$4 sm:$0xff]   ;;  %v4111_v38 = vld [vmem:[%s4862_s19 + $0x504] ss:$8 sps:$4 sm:$0xff]  }
 0x101   : > { %1619 = vmatprep.subr.bf16.mxu1 %v4033_v39  ;;  %v5062_v39 = vpack.i.b16 %v532_v29, %v532_v29  ;;  %v4169_v29 = vld [vmem:[%s4862_s19 + $0x5a0] ss:$8 sps:$4 sm:$0xff]  }
 0x103   : > { %1408 = vmatpush1.bf16.msra.mxu0 %v4028_v40  ;;  %v5064_v40 = vpack.i.b16 %v539_v34, %v539_v34  ;;  %v4180_v34 = vld [vmem:[%s4862_s19 + $0x4c4] ss:$8 sps:$4 sm:$0xff]  }
 0x104   : > { %1620 = vmatpush1.bf16.msra.mxu1 %v4031_v41  ;;  %1409 = vmatprep.subr.bf16.mxu0 %v4036_v43  ;;  %v1234_v41 = vrot.slane %v4982_v21, %v4975_v17  ;;  %v1446_v43 = vrot.slane %v4984_v22, %v4975_v17  ;;  %v4112_v22 = vld [vmem:[%s4862_s19 + $0x410] ss:$8 sps:$4 sm:$0xff]  }
 0x105   : > { %1621 = vmatprep.subr.bf16.mxu1 %v4039_v44  ;;  %v4106_v44 = vld [vmem:[%s4862_s19 + $0x400] ss:$8 sps:$4 sm:$0xff]   ;;  %v1874_v21 = vrot.slane %v5064_v40, %v4948_v57 }
 0x107   : > { %1410 = vmatpush1.bf16.msra.mxu0 %v4034_v45  ;;  %v4109_v45 = vld [vmem:[%s4862_s19 + $0x500] ss:$8 sps:$4 sm:$0xff]  }
 0x108   : > { %1622 = vmatpush1.bf16.msra.mxu1 %v4037_v46  ;;  %1411 = vmatprep.subr.bf16.mxu0 %v4042_v47  ;;  %v4114_v46 = vld [vmem:[%s4862_s19 + $0x414] ss:$8 sps:$4 sm:$0xff]  }
 0x109   : > { %1623 = vmatprep.subr.bf16.mxu1 %v4045_v48  ;;  %v4117_v47 = vld [vmem:[%s4862_s19 + $0x514] ss:$8 sps:$4 sm:$0xff]   ;;  %v1662_v48 = vrot.slane %v5062_v39, %v4948_v57 }
 0x10b   : > { %1412 = vmatpush1.bf16.msra.mxu0 %v4040_v49  ;;  %v4115_v49 = vld [vmem:[%s4862_s19 + $0x510] ss:$8 sps:$4 sm:$0xff]  }
 0x10c   : > { %1624 = vmatpush1.bf16.msra.mxu1 %v4043_v50  ;;  %1413 = vmatprep.subr.bf16.mxu0 %v4048_v52  ;;  %v4120_v50 = vld [vmem:[%s4862_s19 + $0x424] ss:$8 sps:$4 sm:$0xff]  }
 0x10d   : > { %1625 = vmatprep.subr.bf16.mxu1 %v4051_v53  ;;  %v4123_v52 = vld [vmem:[%s4862_s19 + $0x524] ss:$8 sps:$4 sm:$0xff]   ;;  %v4118_v53 = vld [vmem:[%s4862_s19 + $0x420] ss:$8 sps:$4 sm:$0xff]  }
 0x10f   : > { %1414 = vmatpush1.bf16.msra.mxu0 %v4046_v54  ;;  %v4121_v54 = vld [vmem:[%s4862_s19 + $0x520] ss:$8 sps:$4 sm:$0xff]  }
 0x110   : > { %1626 = vmatpush1.bf16.msra.mxu1 %v4049_v55  ;;  %1415 = vmatprep.subr.bf16.mxu0 %v4054_v58  ;;  %v4126_v55 = vld [vmem:[%s4862_s19 + $0x434] ss:$8 sps:$4 sm:$0xff]  }
 0x111   : > { %1627 = vmatprep.subr.bf16.mxu1 %v4057_v59  ;;  %v4129_v58 = vld [vmem:[%s4862_s19 + $0x534] ss:$8 sps:$4 sm:$0xff]   ;;  %v4124_v59 = vld [vmem:[%s4862_s19 + $0x430] ss:$8 sps:$4 sm:$0xff]  }
 0x113   : > { %1416 = vmatpush1.bf16.msra.mxu0 %v4052_v60  ;;  %v4127_v60 = vld [vmem:[%s4862_s19 + $0x530] ss:$8 sps:$4 sm:$0xff]  }
 0x114   : > { %1628 = vmatpush1.bf16.msra.mxu1 %v4055_v61  ;;  %1417 = vmatprep.subr.bf16.mxu0 %v4060_v62  ;;  %v4132_v61 = vld [vmem:[%s4862_s19 + $0x444] ss:$8 sps:$4 sm:$0xff]  }
 0x115   : > { %1629 = vmatprep.subr.bf16.mxu1 %v4063_v63  ;;  %v4135_v62 = vld [vmem:[%s4862_s19 + $0x544] ss:$8 sps:$4 sm:$0xff]   ;;  %v4130_v63 = vld [vmem:[%s4862_s19 + $0x440] ss:$8 sps:$4 sm:$0xff]  }
 0x117   : > { %1418 = vmatpush1.bf16.msra.mxu0 %v4058_v0  ;;  %v4133_v0 = vld [vmem:[%s4862_s19 + $0x540] ss:$8 sps:$4 sm:$0xff]  }
 0x118   : > { %1630 = vmatpush1.bf16.msra.mxu1 %v4061_v1  ;;  %1419 = vmatprep.subr.bf16.mxu0 %v4066_v2  ;;  %v4138_v1 = vld [vmem:[%s4862_s19 + $0x454] ss:$8 sps:$4 sm:$0xff]  }
 0x119   : > { %1631 = vmatprep.subr.bf16.mxu1 %v4069_v3  ;;  %v4141_v2 = vld [vmem:[%s4862_s19 + $0x554] ss:$8 sps:$4 sm:$0xff]   ;;  %v4136_v3 = vld [vmem:[%s4862_s19 + $0x450] ss:$8 sps:$4 sm:$0xff]  }
 0x11b   : > { %1420 = vmatpush1.bf16.msra.mxu0 %v4064_v4  ;;  %v4139_v4 = vld [vmem:[%s4862_s19 + $0x550] ss:$8 sps:$4 sm:$0xff]  }
 0x11c   : > { %1632 = vmatpush1.bf16.msra.mxu1 %v4067_v5  ;;  %1421 = vmatprep.subr.bf16.mxu0 %v4072_v6  ;;  %v4144_v5 = vld [vmem:[%s4862_s19 + $0x464] ss:$8 sps:$4 sm:$0xff]  }
 0x11d   : > { %1633 = vmatprep.subr.bf16.mxu1 %v4075_v7  ;;  %v4147_v6 = vld [vmem:[%s4862_s19 + $0x564] ss:$8 sps:$4 sm:$0xff]  }
 0x11f   : > { %1422 = vmatpush1.bf16.msra.mxu0 %v4070_v8  ;;  %v4570_v8 = vmov 0.0  }
 0x120   : > { %1634 = vmatpush1.bf16.msra.mxu1 %v4073_v9  ;;  %1423 = vmatprep.subr.bf16.mxu0 %v4078_v11  ;;  %500 = vst.msk [vmem:[#allocation2] sm:$0x3] %vm5099_vm0, %v4570_v8  ;;  %501 = vst.msk [vmem:[#allocation2 + $0x2] sm:$0x3] %vm5099_vm0, %v4570_v8  ;;  %v4145_v9 = vld [vmem:[%s4862_s19 + $0x560] ss:$8 sps:$4 sm:$0xff]  }
 0x121   : > { %1635 = vmatprep.subr.bf16.mxu1 %v4081_v12  ;;  %502 = vst.msk [vmem:[#allocation2 + $0x4] sm:$0x3] %vm5099_vm0, %v4570_v8  ;;  %503 = vst.msk [vmem:[#allocation2 + $0x6] sm:$0x3] %vm5099_vm0, %v4570_v8  ;;  %v4150_v11 = vld [vmem:[%s4862_s19 + $0x474] ss:$8 sps:$4 sm:$0xff]  }
 0x122   : > { %504 = vst.msk [vmem:[#allocation2 + $0x8] sm:$0x3] %vm5099_vm0, %v4570_v8  ;;  %505 = vst.msk [vmem:[#allocation2 + $0xa] sm:$0x3] %vm5099_vm0, %v4570_v8  ;;  %v4153_v12 = vld [vmem:[%s4862_s19 + $0x574] ss:$8 sps:$4 sm:$0xff]  }
 0x123   : > { %1424 = vmatpush1.bf16.msra.mxu0 %v4076_v13  ;;  %506 = vst.msk [vmem:[#allocation2 + $0xc] sm:$0x3] %vm5099_vm0, %v4570_v8  ;;  %507 = vst.msk [vmem:[#allocation2 + $0xe] sm:$0x3] %vm5099_vm0, %v4570_v8  ;;  %v4148_v13 = vld [vmem:[%s4862_s19 + $0x470] ss:$8 sps:$4 sm:$0xff]  }
 0x124   : > { %1636 = vmatpush1.bf16.msra.mxu1 %v4079_v14  ;;  %1425 = vmatprep.subr.bf16.mxu0 %v4084_v15  ;;  %v4151_v14 = vld [vmem:[%s4862_s19 + $0x570] ss:$8 sps:$4 sm:$0xff]   ;;  %v4156_v15 = vld [vmem:[%s4862_s19 + $0x484] ss:$8 sps:$4 sm:$0xff]  }
 0x125   : > { %1637 = vmatprep.subr.bf16.mxu1 %v4087_v16  ;;  %v4159_v16 = vld [vmem:[%s4862_s19 + $0x584] ss:$8 sps:$4 sm:$0xff]  }
 0x127   : > { %1426 = vmatpush1.bf16.msra.mxu0 %v4082_v19  ;;  %v4157_v19 = vld [vmem:[%s4862_s19 + $0x580] ss:$8 sps:$4 sm:$0xff]  }
 0x128   : > { %1638 = vmatpush1.bf16.msra.mxu1 %v4085_v20  ;;  %1427 = vmatprep.subr.bf16.mxu0 %v4090_v23  ;;  %v4162_v20 = vld [vmem:[%s4862_s19 + $0x494] ss:$8 sps:$4 sm:$0xff]  }
 0x129   : > { %1639 = vmatprep.subr.bf16.mxu1 %v4093_v24  ;;  %v4165_v23 = vld [vmem:[%s4862_s19 + $0x594] ss:$8 sps:$4 sm:$0xff]   ;;  %v4160_v24 = vld [vmem:[%s4862_s19 + $0x490] ss:$8 sps:$4 sm:$0xff]  }
 0x12b   : > { %1428 = vmatpush1.bf16.msra.mxu0 %v4088_v25  ;;  %v4163_v25 = vld [vmem:[%s4862_s19 + $0x590] ss:$8 sps:$4 sm:$0xff]  }
 0x12c   : > { %1640 = vmatpush1.bf16.msra.mxu1 %v4091_v26  ;;  %1429 = vmatprep.subr.bf16.mxu0 %v4096_v27  ;;  %v4168_v26 = vld [vmem:[%s4862_s19 + $0x4a4] ss:$8 sps:$4 sm:$0xff]  }
 0x12d   : > { %1641 = vmatprep.subr.bf16.mxu1 %v4099_v28  ;;  %v4171_v27 = vld [vmem:[%s4862_s19 + $0x5a4] ss:$8 sps:$4 sm:$0xff]   ;;  %v4166_v28 = vld [vmem:[%s4862_s19 + $0x4a0] ss:$8 sps:$4 sm:$0xff]  }
 0x12f   : > { %1430 = vmatpush1.bf16.msra.mxu0 %v4094_v30  ;;  %v4174_v30 = vld [vmem:[%s4862_s19 + $0x4b4] ss:$8 sps:$4 sm:$0xff]  }
 0x130   : > { %1642 = vmatpush1.bf16.msra.mxu1 %v4097_v31  ;;  %1431 = vmatprep.subr.bf16.mxu0 %v4102_v32  ;;  %v4177_v31 = vld [vmem:[%s4862_s19 + $0x5b4] ss:$8 sps:$4 sm:$0xff]   ;;  %v4172_v32 = vld [vmem:[%s4862_s19 + $0x4b0] ss:$8 sps:$4 sm:$0xff]  }
 0x131   : > { %1643 = vmatprep.subr.bf16.mxu1 %v4105_v33  ;;  %v4175_v33 = vld [vmem:[%s4862_s19 + $0x5b0] ss:$8 sps:$4 sm:$0xff]  }
 0x133   : > { %1432 = vmatpush1.bf16.msra.mxu0 %v4100_v35  ;;  %v4183_v35 = vld [vmem:[%s4862_s19 + $0x5c4] ss:$8 sps:$4 sm:$0xff]  }
 0x134   : > { %1644 = vmatpush1.bf16.msra.mxu1 %v4103_v37  ;;  %1825 = vmatprep.subr.bf16.mxu0 %v4108_v56  ;;  %v4178_v37 = vld [vmem:[%s4862_s19 + $0x4c0] ss:$8 sps:$4 sm:$0xff]  }
 0x135   : > { %2037 = vmatprep.subr.bf16.mxu1 %v4111_v38  ;;  %v4181_v56 = vld [vmem:[%s4862_s19 + $0x5c0] ss:$8 sps:$4 sm:$0xff]   ;;  %v4186_v38 = vld [vmem:[%s4862_s19 + $0x4d4] ss:$8 sps:$4 sm:$0xff]  }
 0x136   : > { %1434 = vmatmul.mubr.bf16.vlgmr.msra.gmra.mrb[4].mxu0 %v1234_v41  ;;  %v4189_v41 = vld [vmem:[%s4862_s19 + $0x5d4] ss:$8 sps:$4 sm:$0xff]  }
 0x137   : > { %1646 = vmatmul.mubr.bf16.vlgmr.msra.gmra.mrb[4].mxu1 %v1446_v43  ;;  %1826 = vmatpush1.bf16.msra.mxu0 %v4106_v44  ;;  %v4184_v43 = vld [vmem:[%s4862_s19 + $0x4d0] ss:$8 sps:$4 sm:$0xff]  }
 0x138   : > { %2038 = vmatpush1.bf16.msra.mxu1 %v4109_v45  ;;  %1827 = vmatprep.subr.bf16.mxu0 %v4114_v46  ;;  %v4187_v44 = vld [vmem:[%s4862_s19 + $0x5d0] ss:$8 sps:$4 sm:$0xff]   ;;  %v4192_v45 = vld [vmem:[%s4862_s19 + $0x4e4] ss:$8 sps:$4 sm:$0xff]  }
 0x139   : > { %2039 = vmatprep.subr.bf16.mxu1 %v4117_v47  ;;  %1857 = vmatprep.mubr.bf16.mxu0 %v1662_v48  ;;  %v4195_v46 = vld [vmem:[%s4862_s19 + $0x5e4] ss:$8 sps:$4 sm:$0xff]   ;;  %v4190_v47 = vld [vmem:[%s4862_s19 + $0x4e0] ss:$8 sps:$4 sm:$0xff]  }
 0x13a   : > { %2069 = vmatprep.mubr.bf16.mxu1 %v1874_v21  ;;  %v4193_v48 = vld [vmem:[%s4862_s19 + $0x5e0] ss:$8 sps:$4 sm:$0xff]   ;;  %v533_v21 = vcombine.high %v4966_v10, %v4966_v10 }
 0x13b   : > { %1828 = vmatpush1.bf16.msra.mxu0 %v4112_v22  ;;  %v4198_v22 = vld [vmem:[%s4862_s19 + $0x4f4] ss:$8 sps:$4 sm:$0xff]  }
 0x13c   : > { %2040 = vmatpush1.bf16.msra.mxu1 %v4115_v49  ;;  %1829 = vmatprep.subr.bf16.mxu0 %v4120_v50  ;;  %v4201_v49 = vld [vmem:[%s4862_s19 + $0x5f4] ss:$8 sps:$4 sm:$0xff]   ;;  %v4196_v50 = vld [vmem:[%s4862_s19 + $0x4f0] ss:$8 sps:$4 sm:$0xff]   ;;  %v5169_v10 = vpack.i.b16 %v533_v21, %v533_v21 }
 0x13d   : > { %2041 = vmatprep.subr.bf16.mxu1 %v4123_v52  ;;  %v4199_v52 = vld [vmem:[%s4862_s19 + $0x5f0] ss:$8 sps:$4 sm:$0xff]  }
 0x13f   : > { %1830 = vmatpush1.bf16.msra.mxu0 %v4118_v53  ;;  %v541_v53 = vunpack.i.h.s16 %v533_v21  ;;  %v4268_v21 = vld [vmem:[%s4862_s19 + $0x6b0] ss:$8 sps:$4 sm:$0xff]  }
 0x140   : > { %2042 = vmatpush1.bf16.msra.mxu1 %v4121_v54  ;;  %1831 = vmatprep.subr.bf16.mxu0 %v4126_v55  ;;  %v4204_v54 = vld [vmem:[%s4862_s19 + $0x604] ss:$8 sps:$4 sm:$0xff]  }
 0x141   : > { %2043 = vmatprep.subr.bf16.mxu1 %v4129_v58  ;;  %v4207_v55 = vld [vmem:[%s4862_s19 + $0x704] ss:$8 sps:$4 sm:$0xff]   ;;  %v5171_v58 = vpack.i.b16 %v541_v53, %v541_v53  ;;  %v4277_v53 = vld [vmem:[%s4862_s19 + $0x7c0] ss:$8 sps:$4 sm:$0xff]  }
 0x143   : > { %1832 = vmatpush1.bf16.msra.mxu0 %v4124_v59  ;;  %v1658_v59 = vrot.slane %v5062_v39, %v4975_v17  ;;  %v2298_v39 = vrot.slane %v5171_v58, %v4948_v57 }
 0x144   : > { %2044 = vmatpush1.bf16.msra.mxu1 %v4127_v60  ;;  %1833 = vmatprep.subr.bf16.mxu0 %v4132_v61  ;;  %v1870_v60 = vrot.slane %v5064_v40, %v4975_v17  ;;  %v4202_v61 = vld [vmem:[%s4862_s19 + $0x600] ss:$8 sps:$4 sm:$0xff]   ;;  %v4208_v40 = vld [vmem:[%s4862_s19 + $0x610] ss:$8 sps:$4 sm:$0xff]  }
 0x145   : > { %2045 = vmatprep.subr.bf16.mxu1 %v4135_v62  ;;  %v4205_v62 = vld [vmem:[%s4862_s19 + $0x700] ss:$8 sps:$4 sm:$0xff]  }
 0x147   : > { %1834 = vmatpush1.bf16.msra.mxu0 %v4130_v63  ;;  %v4210_v63 = vld [vmem:[%s4862_s19 + $0x614] ss:$8 sps:$4 sm:$0xff]  }
 0x148   : > { %2046 = vmatpush1.bf16.msra.mxu1 %v4133_v0  ;;  %1835 = vmatprep.subr.bf16.mxu0 %v4138_v1  ;;  %v4213_v0 = vld [vmem:[%s4862_s19 + $0x714] ss:$8 sps:$4 sm:$0xff]   ;;  %v2086_v1 = vrot.slane %v5169_v10, %v4948_v57 }
 0x149   : > { %2047 = vmatprep.subr.bf16.mxu1 %v4141_v2  ;;  %v4211_v2 = vld [vmem:[%s4862_s19 + $0x710] ss:$8 sps:$4 sm:$0xff]  }
 0x14b   : > { %1836 = vmatpush1.bf16.msra.mxu0 %v4136_v3  ;;  %v4216_v3 = vld [vmem:[%s4862_s19 + $0x624] ss:$8 sps:$4 sm:$0xff]  }
 0x14c   : > { %2048 = vmatpush1.bf16.msra.mxu1 %v4139_v4  ;;  %1837 = vmatprep.subr.bf16.mxu0 %v4144_v5  ;;  %v4219_v4 = vld [vmem:[%s4862_s19 + $0x724] ss:$8 sps:$4 sm:$0xff]   ;;  %v4214_v5 = vld [vmem:[%s4862_s19 + $0x620] ss:$8 sps:$4 sm:$0xff]  }
 0x14d   : > { %2049 = vmatprep.subr.bf16.mxu1 %v4147_v6  ;;  %v4217_v6 = vld [vmem:[%s4862_s19 + $0x720] ss:$8 sps:$4 sm:$0xff]  }
 0x14f   : > { %1838 = vmatpush1.bf16.msra.mxu0 %v4142_v36  ;;  %v4222_v36 = vld [vmem:[%s4862_s19 + $0x634] ss:$8 sps:$4 sm:$0xff]  }
 0x150   : > { %2050 = vmatpush1.bf16.msra.mxu1 %v4145_v9  ;;  %1839 = vmatprep.subr.bf16.mxu0 %v4150_v11  ;;  %v4225_v9 = vld [vmem:[%s4862_s19 + $0x734] ss:$8 sps:$4 sm:$0xff]   ;;  %v4220_v11 = vld [vmem:[%s4862_s19 + $0x630] ss:$8 sps:$4 sm:$0xff]  }
 0x151   : > { %2051 = vmatprep.subr.bf16.mxu1 %v4153_v12  ;;  %v4223_v12 = vld [vmem:[%s4862_s19 + $0x730] ss:$8 sps:$4 sm:$0xff]  }
 0x153   : > { %1840 = vmatpush1.bf16.msra.mxu0 %v4148_v13  ;;  %v4228_v13 = vld [vmem:[%s4862_s19 + $0x644] ss:$8 sps:$4 sm:$0xff]  }
 0x154   : > { %2052 = vmatpush1.bf16.msra.mxu1 %v4151_v14  ;;  %1841 = vmatprep.subr.bf16.mxu0 %v4156_v15  ;;  %v4231_v14 = vld [vmem:[%s4862_s19 + $0x744] ss:$8 sps:$4 sm:$0xff]   ;;  %v4226_v15 = vld [vmem:[%s4862_s19 + $0x640] ss:$8 sps:$4 sm:$0xff]  }
 0x155   : > { %2053 = vmatprep.subr.bf16.mxu1 %v4159_v16  ;;  %v4229_v16 = vld [vmem:[%s4862_s19 + $0x740] ss:$8 sps:$4 sm:$0xff]  }
 0x157   : > { %1842 = vmatpush1.bf16.msra.mxu0 %v4154_v18  ;;  %v4234_v18 = vld [vmem:[%s4862_s19 + $0x654] ss:$8 sps:$4 sm:$0xff]  }
 0x158   : > { %2054 = vmatpush1.bf16.msra.mxu1 %v4157_v19  ;;  %1843 = vmatprep.subr.bf16.mxu0 %v4162_v20  ;;  %v4237_v19 = vld [vmem:[%s4862_s19 + $0x754] ss:$8 sps:$4 sm:$0xff]   ;;  %v4232_v20 = vld [vmem:[%s4862_s19 + $0x650] ss:$8 sps:$4 sm:$0xff]  }
 0x159   : > { %2055 = vmatprep.subr.bf16.mxu1 %v4165_v23  ;;  %v4235_v23 = vld [vmem:[%s4862_s19 + $0x750] ss:$8 sps:$4 sm:$0xff]  }
 0x15b   : > { %1844 = vmatpush1.bf16.msra.mxu0 %v4160_v24  ;;  %v4240_v24 = vld [vmem:[%s4862_s19 + $0x664] ss:$8 sps:$4 sm:$0xff]  }
 0x15c   : > { %2056 = vmatpush1.bf16.msra.mxu1 %v4163_v25  ;;  %1845 = vmatprep.subr.bf16.mxu0 %v4168_v26  ;;  %v4243_v25 = vld [vmem:[%s4862_s19 + $0x764] ss:$8 sps:$4 sm:$0xff]   ;;  %v4238_v26 = vld [vmem:[%s4862_s19 + $0x660] ss:$8 sps:$4 sm:$0xff]  }
 0x15d   : > { %2057 = vmatprep.subr.bf16.mxu1 %v4171_v27  ;;  %v4241_v27 = vld [vmem:[%s4862_s19 + $0x760] ss:$8 sps:$4 sm:$0xff]  }
 0x15f   : > { %1846 = vmatpush1.bf16.msra.mxu0 %v4166_v28  ;;  %v4246_v28 = vld [vmem:[%s4862_s19 + $0x674] ss:$8 sps:$4 sm:$0xff]  }
 0x160   : > { %2058 = vmatpush1.bf16.msra.mxu1 %v4169_v29  ;;  %1847 = vmatprep.subr.bf16.mxu0 %v4174_v30  ;;  %v4249_v29 = vld [vmem:[%s4862_s19 + $0x774] ss:$8 sps:$4 sm:$0xff]   ;;  %v4244_v30 = vld [vmem:[%s4862_s19 + $0x670] ss:$8 sps:$4 sm:$0xff]  }
 0x161   : > { %2059 = vmatprep.subr.bf16.mxu1 %v4177_v31  ;;  %v4247_v31 = vld [vmem:[%s4862_s19 + $0x770] ss:$8 sps:$4 sm:$0xff]  }
 0x163   : > { %1848 = vmatpush1.bf16.msra.mxu0 %v4172_v32  ;;  %v4252_v32 = vld [vmem:[%s4862_s19 + $0x684] ss:$8 sps:$4 sm:$0xff]  }
 0x164   : > { %2060 = vmatpush1.bf16.msra.mxu1 %v4175_v33  ;;  %1849 = vmatprep.subr.bf16.mxu0 %v4180_v34  ;;  %v4255_v33 = vld [vmem:[%s4862_s19 + $0x784] ss:$8 sps:$4 sm:$0xff]   ;;  %v4250_v34 = vld [vmem:[%s4862_s19 + $0x680] ss:$8 sps:$4 sm:$0xff]  }
 0x165   : > { %2061 = vmatprep.subr.bf16.mxu1 %v4183_v35  ;;  %v4253_v35 = vld [vmem:[%s4862_s19 + $0x780] ss:$8 sps:$4 sm:$0xff]  }
 0x167   : > { %1850 = vmatpush1.bf16.msra.mxu0 %v4178_v37  ;;  %v4258_v37 = vld [vmem:[%s4862_s19 + $0x694] ss:$8 sps:$4 sm:$0xff]  }
 0x168   : > { %2062 = vmatpush1.bf16.msra.mxu1 %v4181_v56  ;;  %1851 = vmatprep.subr.bf16.mxu0 %v4186_v38  ;;  %v4261_v56 = vld [vmem:[%s4862_s19 + $0x794] ss:$8 sps:$4 sm:$0xff]   ;;  %v4256_v38 = vld [vmem:[%s4862_s19 + $0x690] ss:$8 sps:$4 sm:$0xff]  }
 0x169   : > { %2063 = vmatprep.subr.bf16.mxu1 %v4189_v41  ;;  %v4259_v41 = vld [vmem:[%s4862_s19 + $0x790] ss:$8 sps:$4 sm:$0xff]  }
 0x16b   : > { %1852 = vmatpush1.bf16.msra.mxu0 %v4184_v43  ;;  %v4264_v43 = vld [vmem:[%s4862_s19 + $0x6a4] ss:$8 sps:$4 sm:$0xff]  }
 0x16c   : > { %2064 = vmatpush1.bf16.msra.mxu1 %v4187_v44  ;;  %1853 = vmatprep.subr.bf16.mxu0 %v4192_v45  ;;  %v4267_v44 = vld [vmem:[%s4862_s19 + $0x7a4] ss:$8 sps:$4 sm:$0xff]   ;;  %v4262_v45 = vld [vmem:[%s4862_s19 + $0x6a0] ss:$8 sps:$4 sm:$0xff]  }
 0x16d   : > { %2065 = vmatprep.subr.bf16.mxu1 %v4195_v46  ;;  %v4265_v46 = vld [vmem:[%s4862_s19 + $0x7a0] ss:$8 sps:$4 sm:$0xff]  }
 0x16f   : > { %1854 = vmatpush1.bf16.msra.mxu0 %v4190_v47  ;;  %v4270_v47 = vld [vmem:[%s4862_s19 + $0x6b4] ss:$8 sps:$4 sm:$0xff]  }
 0x170   : > { %2066 = vmatpush1.bf16.msra.mxu1 %v4193_v48  ;;  %1855 = vmatprep.subr.bf16.mxu0 %v4198_v22  ;;  %v4273_v48 = vld [vmem:[%s4862_s19 + $0x7b4] ss:$8 sps:$4 sm:$0xff]   ;;  %v4271_v22 = vld [vmem:[%s4862_s19 + $0x7b0] ss:$8 sps:$4 sm:$0xff]  }
 0x171   : > { %2067 = vmatprep.subr.bf16.mxu1 %v4201_v49  ;;  %v4276_v49 = vld [vmem:[%s4862_s19 + $0x6c4] ss:$8 sps:$4 sm:$0xff]  }
 0x173   : > { %1856 = vmatpush1.bf16.msra.mxu0 %v4196_v50  ;;  %v4279_v50 = vld [vmem:[%s4862_s19 + $0x7c4] ss:$8 sps:$4 sm:$0xff]  }
 0x174   : > { %2068 = vmatpush1.bf16.msra.mxu1 %v4199_v52  ;;  %2249 = vmatprep.subr.bf16.mxu0 %v4204_v54  ;;  %v4274_v52 = vld [vmem:[%s4862_s19 + $0x6c0] ss:$8 sps:$4 sm:$0xff]   ;;  %v4282_v54 = vld [vmem:[%s4862_s19 + $0x6d4] ss:$8 sps:$4 sm:$0xff]  }
 0x175   : > { %2461 = vmatprep.subr.bf16.mxu1 %v4207_v55  ;;  %v4285_v55 = vld [vmem:[%s4862_s19 + $0x7d4] ss:$8 sps:$4 sm:$0xff]  }
 0x176   : > { %1858 = vmatmul.mubr.bf16.vlgmr.msra.gmra.mrb[8].mxu0 %v1658_v59  ;;  %v4280_v59 = vld [vmem:[%s4862_s19 + $0x6d0] ss:$8 sps:$4 sm:$0xff]  }
 0x177   : > { %2070 = vmatmul.mubr.bf16.vlgmr.msra.gmra.mrb[8].mxu1 %v1870_v60  ;;  %2250 = vmatpush1.bf16.msra.mxu0 %v4202_v61  ;;  %v4283_v60 = vld [vmem:[%s4862_s19 + $0x7d0] ss:$8 sps:$4 sm:$0xff]   ;;  %v4288_v61 = vld [vmem:[%s4862_s19 + $0x6e4] ss:$8 sps:$4 sm:$0xff]  }
 0x178   : > { %2462 = vmatpush1.bf16.msra.mxu1 %v4205_v62  ;;  %2251 = vmatprep.subr.bf16.mxu0 %v4210_v63  ;;  %v4291_v62 = vld [vmem:[%s4862_s19 + $0x7e4] ss:$8 sps:$4 sm:$0xff]   ;;  %v4286_v63 = vld [vmem:[%s4862_s19 + $0x6e0] ss:$8 sps:$4 sm:$0xff]  }
 0x179   : > { %2463 = vmatprep.subr.bf16.mxu1 %v4213_v0  ;;  %2281 = vmatprep.mubr.bf16.mxu0 %v2086_v1  ;;  %v4289_v0 = vld [vmem:[%s4862_s19 + $0x7e0] ss:$8 sps:$4 sm:$0xff]   ;;  %v4294_v1 = vld [vmem:[%s4862_s19 + $0x6f4] ss:$8 sps:$4 sm:$0xff]  }
 0x17a   : > { %2493 = vmatprep.mubr.bf16.mxu1 %v2298_v39  ;;  %v4297_v39 = vld [vmem:[%s4862_s19 + $0x7f4] ss:$8 sps:$4 sm:$0xff]  }
 0x17b   : > { %2252 = vmatpush1.bf16.msra.mxu0 %v4208_v40  ;;  %v4292_v40 = vld [vmem:[%s4862_s19 + $0x6f0] ss:$8 sps:$4 sm:$0xff]  }
 0x17c   : > { %2464 = vmatpush1.bf16.msra.mxu1 %v4211_v2  ;;  %2253 = vmatprep.subr.bf16.mxu0 %v4216_v3  ;;  %v4295_v2 = vld [vmem:[%s4862_s19 + $0x7f0] ss:$8 sps:$4 sm:$0xff]   ;;  %v2082_v3 = vrot.slane %v5169_v10, %v4975_v17 }
 0x17d   : > { %2465 = vmatprep.subr.bf16.mxu1 %v4219_v4  ;;  %v2294_v4 = vrot.slane %v5171_v58, %v4975_v17 }
 0x17f   : > { %2254 = vmatpush1.bf16.msra.mxu0 %v4214_v5 }
 0x180   : > { %2466 = vmatpush1.bf16.msra.mxu1 %v4217_v6  ;;  %2255 = vmatprep.subr.bf16.mxu0 %v4222_v36 }
 0x181   : > { %2467 = vmatprep.subr.bf16.mxu1 %v4225_v9 }
 0x183   : > { %2256 = vmatpush1.bf16.msra.mxu0 %v4220_v11 }
 0x184   : > { %2468 = vmatpush1.bf16.msra.mxu1 %v4223_v12  ;;  %2257 = vmatprep.subr.bf16.mxu0 %v4228_v13 }
 0x185   : > { %2469 = vmatprep.subr.bf16.mxu1 %v4231_v14 }
 0x187   : > { %2258 = vmatpush1.bf16.msra.mxu0 %v4226_v15 }
 0x188   : > { %2470 = vmatpush1.bf16.msra.mxu1 %v4229_v16  ;;  %2259 = vmatprep.subr.bf16.mxu0 %v4234_v18  ;;  %v542_v18 = vld [vmem:[#allocation2] sm:$0x3] }
 0x189   : > { %2471 = vmatprep.subr.bf16.mxu1 %v4237_v19  ;;  %v543_v19 = vld [vmem:[#allocation2 + $0x2] sm:$0x3] }
 0x18b   : > { %2260 = vmatpush1.bf16.msra.mxu0 %v4232_v20 }
 0x18c   : > { %2472 = vmatpush1.bf16.msra.mxu1 %v4235_v23  ;;  %2261 = vmatprep.subr.bf16.mxu0 %v4240_v24 }
 0x18d   : > { %2473 = vmatprep.subr.bf16.mxu1 %v4243_v25 }
 0x18f   : > { %2262 = vmatpush1.bf16.msra.mxu0 %v4238_v26  ;;  %v4298_v26 = vld [vmem:[#allocation5 + $0x40] sm:$0xff]  }
 0x190   : > { %2474 = vmatpush1.bf16.msra.mxu1 %v4241_v27  ;;  %2263 = vmatprep.subr.bf16.mxu0 %v4246_v28 }
 0x191   : > { %2475 = vmatprep.subr.bf16.mxu1 %v4249_v29  ;;  %v4299_v29 = vld [vmem:[#allocation5] sm:$0xff]  }
 0x193   : > { %2264 = vmatpush1.bf16.msra.mxu0 %v4244_v30 }
 0x194   : > { %2476 = vmatpush1.bf16.msra.mxu1 %v4247_v31  ;;  %2265 = vmatprep.subr.bf16.mxu0 %v4252_v32 }
 0x195   : > { %2477 = vmatprep.subr.bf16.mxu1 %v4255_v33 }
 0x197   : > { %2266 = vmatpush1.bf16.msra.mxu0 %v4250_v34 }
 0x198   : > { %2478 = vmatpush1.bf16.msra.mxu1 %v4253_v35  ;;  %2267 = vmatprep.subr.bf16.mxu0 %v4258_v37 }
 0x199   : > { %2479 = vmatprep.subr.bf16.mxu1 %v4261_v56 }
 0x19b   : > { %2268 = vmatpush1.bf16.msra.mxu0 %v4256_v38  ;;  %v4300_v38 = vld [vmem:[#allocation5 + $0x48] sm:$0xff]  }
 0x19c   : > { %2480 = vmatpush1.bf16.msra.mxu1 %v4259_v41  ;;  %2269 = vmatprep.subr.bf16.mxu0 %v4264_v43 }
 0x19d   : > { %2481 = vmatprep.subr.bf16.mxu1 %v4267_v44  ;;  %v4301_v44 = vld [vmem:[#allocation5 + $0x8] sm:$0xff]  }
 0x19f   : > { %2270 = vmatpush1.bf16.msra.mxu0 %v4262_v45  ;;  %v544_v45 = vld [vmem:[#allocation2 + $0x4] sm:$0x3] }
 0x1a0   : > { %2482 = vmatpush1.bf16.msra.mxu1 %v4265_v46  ;;  %2271 = vmatprep.subr.bf16.mxu0 %v4270_v47  ;;  %v545_v46 = vld [vmem:[#allocation2 + $0x6] sm:$0x3] }
 0x1a1   : > { %2483 = vmatprep.subr.bf16.mxu1 %v4273_v48 }
 0x1a3   : > { %2272 = vmatpush1.bf16.msra.mxu0 %v4268_v21  ;;  %v4302_v21 = vld [vmem:[#allocation5 + $0x50] sm:$0xff]  }
 0x1a4   : > { %2484 = vmatpush1.bf16.msra.mxu1 %v4271_v22  ;;  %2273 = vmatprep.subr.bf16.mxu0 %v4276_v49 }
 0x1a5   : > { %2485 = vmatprep.subr.bf16.mxu1 %v4279_v50  ;;  %v4303_v50 = vld [vmem:[#allocation5 + $0x10] sm:$0xff]  }
 0x1a7   : > { %2274 = vmatpush1.bf16.msra.mxu0 %v4274_v52  ;;  %v4304_v52 = vld [vmem:[#allocation5 + $0x58] sm:$0xff]  }
 0x1a8   : > { %2486 = vmatpush1.bf16.msra.mxu1 %v4277_v53  ;;  %2275 = vmatprep.subr.bf16.mxu0 %v4282_v54  ;;  %v4305_v53 = vld [vmem:[#allocation5 + $0x18] sm:$0xff]   ;;  %v4306_v54 = vld [vmem:[#allocation5 + $0x60] sm:$0xff]  }
 0x1a9   : > { %2487 = vmatprep.subr.bf16.mxu1 %v4285_v55  ;;  %v4307_v55 = vld [vmem:[#allocation5 + $0x20] sm:$0xff]  }
 0x1ab   : > { %2276 = vmatpush1.bf16.msra.mxu0 %v4280_v59  ;;  %v4308_v59 = vld [vmem:[#allocation5 + $0x68] sm:$0xff]  }
 0x1ac   : > { %2488 = vmatpush1.bf16.msra.mxu1 %v4283_v60  ;;  %2277 = vmatprep.subr.bf16.mxu0 %v4288_v61  ;;  %v4309_v60 = vld [vmem:[#allocation5 + $0x28] sm:$0xff]   ;;  %v4310_v61 = vld [vmem:[#allocation5 + $0x70] sm:$0xff]  }
 0x1ad   : > { %2489 = vmatprep.subr.bf16.mxu1 %v4291_v62  ;;  %v4311_v62 = vld [vmem:[#allocation5 + $0x30] sm:$0xff]  }
 0x1af   : > { %2278 = vmatpush1.bf16.msra.mxu0 %v4286_v63  ;;  %v4312_v63 = vld [vmem:[#allocation5 + $0x78] sm:$0xff]  }
 0x1b0   : > { %2490 = vmatpush1.bf16.msra.mxu1 %v4289_v0  ;;  %2279 = vmatprep.subr.bf16.mxu0 %v4294_v1  ;;  %v4313_v0 = vld [vmem:[#allocation5 + $0x38] sm:$0xff]   ;;  %v4314_v1 = vld [vmem:[%s5413_s22] sm:$0xff]  }
 0x1b1   : > { %2491 = vmatprep.subr.bf16.mxu1 %v4297_v39  ;;  %v4315_v39 = vld [vmem:[%s5413_s22 + $0x8] sm:$0xff]  }
 0x1b3   : > { %2280 = vmatpush1.bf16.msra.mxu0 %v4292_v40  ;;  %v4316_v40 = vld [vmem:[%s5413_s22 + $0x10] sm:$0xff]  }
 0x1b4   : > { %2492 = vmatpush1.bf16.msra.mxu1 %v4295_v2  ;;  %3737 = vmatprep.subr.bf16.mxu0 %v4298_v26  ;;  %v4317_v2 = vld [vmem:[%s5413_s22 + $0x18] sm:$0xff]   ;;  %v2692_v26 = vsub.s32 2, %v4924_v42 }
 0x1b5   : > { %3771 = vmatprep.subr.bf16.mxu1 %v4570_v8 }
 0x1b6   : > { %2282 = vmatmul.mubr.bf16.vlgmr.msra.gmra.mrb[12].mxu0 %v2082_v3  ;;  %v4318_v3 = vld [vmem:[%s5413_s22 + $0x20] sm:$0xff]  }
 0x1b7   : > { %2494 = vmatmul.mubr.bf16.vlgmr.msra.gmra.mrb[12].mxu1 %v2294_v4  ;;  %3738 = vmatpush3.bf16.msra.mxu0 %v4299_v29  ;;  %v4319_v4 = vld [vmem:[%s5413_s22 + $0x28] sm:$0xff]  }
 0x1b8   : > { %3739 = vmatprep.subr.bf16.mxu0 %v4300_v38  ;;  %3772 = vmatpush3.bf16.msra.mxu1 %v4314_v1 }
 0x1b9   : > { %3773 = vmatprep.subr.bf16.mxu1 %v4570_v8  ;;  %3787 = vmatprep.mubr.msk.bf16.mxu1 %vm4571_vm8, %v4570_v8 }
 0x1bb   : > { %3740 = vmatpush3.bf16.msra.mxu0 %v4301_v44 }
 0x1bc   : > { %3741 = vmatprep.subr.bf16.mxu0 %v4302_v21  ;;  %3774 = vmatpush3.bf16.msra.mxu1 %v4315_v39 }
 0x1bd   : > { %3775 = vmatprep.subr.bf16.mxu1 %v4570_v8 }
 0x1bf   : > { %3742 = vmatpush3.bf16.msra.mxu0 %v4303_v50 }
 0x1c0   : > { %3743 = vmatprep.subr.bf16.mxu0 %v4304_v52  ;;  %3776 = vmatpush3.bf16.msra.mxu1 %v4316_v40 }
 0x1c1   : > { %3777 = vmatprep.subr.bf16.mxu1 %v4570_v8 }
 0x1c3   : > { %3744 = vmatpush3.bf16.msra.mxu0 %v4305_v53 }
 0x1c4   : > { %3745 = vmatprep.subr.bf16.mxu0 %v4306_v54  ;;  %3778 = vmatpush3.bf16.msra.mxu1 %v4317_v2 }
 0x1c5   : > { %3779 = vmatprep.subr.bf16.mxu1 %v4570_v8 }
 0x1c7   : > { %3746 = vmatpush3.bf16.msra.mxu0 %v4307_v55 }
 0x1c8   : > { %3747 = vmatprep.subr.bf16.mxu0 %v4308_v59  ;;  %3780 = vmatpush3.bf16.msra.mxu1 %v4318_v3 }
 0x1c9   : > { %v1011_v5 = vpop.f32.mrb[0].mxu0  ;;  %3781 = vmatprep.subr.bf16.mxu1 %v4570_v8 }
 0x1ca   : > { %v1223_v6 = vpop.f32.mrb[0].mxu1  ;;  %v1013_v36 = vpop.f32.mrb[1].mxu0 }
 0x1cb   : > { %v1225_v9 = vpop.f32.mrb[1].mxu1  ;;  %v2518_v11 = vcombine.low %v1011_v5, %v1013_v36  ;;  %v1015_v13 = vpop.f32.mrb[2].mxu0  ;;  %3748 = vmatpush3.bf16.msra.mxu0 %v4309_v60 }
 0x1cc   : > { %v2533_v12 = vcombine.low %v1223_v6, %v1225_v9  ;;  %v1227_v14 = vpop.f32.mrb[2].mxu1  ;;  %v1016_v15 = vpop.f32.mrb[3].mxu0  ;;  %3749 = vmatprep.subr.bf16.mxu0 %v4310_v61  ;;  %3782 = vmatpush3.bf16.msra.mxu1 %v4319_v4 }
 0x1cd   : > { %v1228_v16 = vpop.f32.mrb[3].mxu1  ;;  %v2525_v10 = vrot.slane %v2518_v11, %v4939_v51  ;;  %3783 = vmatprep.subr.bf16.mxu1 %v4570_v8 }
 0x1ce   : > { %v2540_v58 = vrot.slane %v2533_v12, %v4939_v51 }
 0x1cf   : > { %v2532_v20 = vrot.slane %v2525_v10, %v4939_v51  ;;  %3750 = vmatpush3.bf16.msra.mxu0 %v4311_v62 }
 0x1d0   : > { %v2547_v23 = vrot.slane %v2540_v58, %v4939_v51  ;;  %3751 = vmatprep.subr.bf16.mxu0 %v4312_v63 }
 0x1d1   : > { %v2646_v24 = vadd.f32 %v2532_v20, %v542_v18  ;;  %v546_v18 = vld [vmem:[#allocation2 + $0x8] sm:$0x3] }
 0x1d2   : > { %v2647_v25 = vadd.f32 %v2547_v23, %v543_v19  ;;  %v547_v19 = vld [vmem:[#allocation2 + $0xa] sm:$0x3] }
 0x1d3   : > { %2658 = vst.msk [vmem:[#allocation2] sm:$0x3] %vm5099_vm0, %v2646_v24  ;;  %3752 = vmatpush3.bf16.msra.mxu0 %v4313_v0 }
 0x1d4   : > { %2659 = vst.msk [vmem:[#allocation2 + $0x2] sm:$0x3] %vm5099_vm0, %v2647_v25  ;;  %3791 = vmatprep.subr.bf16.mxu0 %v4570_v8 }
 0x209   : > { %v1435_v27 = vpop.f32.mrb[4].mxu0 }
 0x20a   : > { %v1647_v28 = vpop.f32.mrb[4].mxu1  ;;  %v1437_v30 = vpop.f32.mrb[5].mxu0 }
 0x20b   : > { %v1649_v31 = vpop.f32.mrb[5].mxu1  ;;  %v2548_v32 = vcombine.low %v1435_v27, %v1437_v30  ;;  %v1439_v34 = vpop.f32.mrb[6].mxu0  ;;  %v2670_v30 = vld [vmem:[#allocation2 + $0x2] sm:$0x3] }
 0x20c   : > { %v2563_v33 = vcombine.low %v1647_v28, %v1649_v31  ;;  %v1651_v35 = vpop.f32.mrb[6].mxu1  ;;  %v1440_v37 = vpop.f32.mrb[7].mxu0  ;;  %v2696_v28 = vsub.s32 3, %v4924_v42 }
 0x20d   : > { %v1652_v56 = vpop.f32.mrb[7].mxu1  ;;  %v2555_v41 = vrot.slane %v2548_v32, %v4939_v51  ;;  %v5298_v27 = vpop.permute.xlu0 %2680  ;;  %v2700_v32 = vsub.s32 4, %v4924_v42  ;;  %v2669_v35 = vld [vmem:[#allocation2] sm:$0x3] }
 0x20e   : > { %v2570_v43 = vrot.slane %v2563_v33, %v4939_v51  ;;  %v2689_v29 = vrot.slane %v5298_v27, %v4948_v57  ;;  %v2693_v31 = vrot.slane %v5298_v27, %v2692_v26  ;;  %v2685_v34 = vrot.slane %v5298_v27, %v4975_v17 }
 0x20f   : > { %v2562_v47 = vrot.slane %v2555_v41, %v4939_v51  ;;  %v2697_v37 = vrot.slane %v5298_v27, %v2696_v28  ;;  %v2701_v44 = vrot.slane %v5298_v27, %v2700_v32 }
 0x210   : > { %v2577_v48 = vrot.slane %v2570_v43, %v4939_v51  ;;  %v2723_v56 = vmul.f32 %v2689_v29, %v2670_v30  ;;  %v2704_v43 = vsub.s32 5, %v4924_v42 }
 0x211   : > { %v2648_v22 = vadd.f32 %v2562_v47, %v544_v45  ;;  %v2722_v45 = vmul.f32 %v2685_v34, %v2669_v35  ;;  %v2708_v35 = vsub.s32 6, %v4924_v42 }
 0x212   : > { %v2649_v49 = vadd.f32 %v2577_v48, %v545_v46  ;;  %v2749_v21 = vrot.slane %v2723_v56, %v4975_v17  ;;  %v2705_v62 = vrot.slane %v5298_v27, %v2704_v43 }
 0x213   : > { %2660 = vst.msk [vmem:[#allocation2 + $0x4] sm:$0x3] %vm5099_vm0, %v2648_v22  ;;  %v2753_v22 = vrot.slane %v2723_v56, %v4948_v57  ;;  %v2741_v39 = vrot.slane %v2722_v45, %v4975_v17  ;;  %v2745_v40 = vrot.slane %v2722_v45, %v4948_v57 }
 0x214   : > { %2661 = vst.msk [vmem:[#allocation2 + $0x6] sm:$0x3] %vm5099_vm0, %v2649_v49 }
 0x215   : > { %v2818_v28 = vpack.c.bf16 %v2741_v39, %v2741_v39  ;;  %v2819_v29 = vpack.c.bf16 %v2745_v40, %v2745_v40 }
 0x217   : > { %v2889_v7 = vunpack.c.l.b16 %v2818_v28 }
 0x21a   : > { %v2671_v33 = vld [vmem:[#allocation2 + $0x4] sm:$0x3] }
 0x21b   : > { %v2672_v38 = vld [vmem:[#allocation2 + $0x6] sm:$0x3]  ;;  %v2724_v41 = vmul.f32 %v2693_v31, %v2671_v33 }
 0x21c   : > { %v2725_v52 = vmul.f32 %v2697_v37, %v2672_v38  ;;  %v2712_v37 = vsub.s32 7, %v4924_v42 }
 0x21d   : > { %v2761_v60 = vrot.slane %v2724_v41, %v4948_v57  ;;  %v2757_v61 = vrot.slane %v2724_v41, %v4975_v17 }
 0x249   : > { %v1859_v5 = vpop.f32.mrb[8].mxu0 }
 0x24a   : > { %v2071_v6 = vpop.f32.mrb[8].mxu1  ;;  %v1861_v36 = vpop.f32.mrb[9].mxu0 }
 0x24b   : > { %v2073_v9 = vpop.f32.mrb[9].mxu1  ;;  %v2578_v11 = vcombine.low %v1859_v5, %v1861_v36  ;;  %v1863_v13 = vpop.f32.mrb[10].mxu0  ;;  %v2820_v5 = vpack.c.bf16 %v2749_v21, %v2749_v21  ;;  %v548_v36 = vld [vmem:[#allocation2 + $0xc] sm:$0x3] }
 0x24c   : > { %v2593_v12 = vcombine.low %v2071_v6, %v2073_v9  ;;  %v2075_v14 = vpop.f32.mrb[10].mxu1  ;;  %v1864_v15 = vpop.f32.mrb[11].mxu0  ;;  %v2821_v6 = vpack.c.bf16 %v2753_v22, %v2753_v22  ;;  %v549_v9 = vld [vmem:[#allocation2 + $0xe] sm:$0x3] }
 0x24d   : > { %v2076_v16 = vpop.f32.mrb[11].mxu1  ;;  %v2585_v10 = vrot.slane %v2578_v11, %v4939_v51  ;;  %v2769_v11 = vrot.slane %v2725_v52, %v4948_v57  ;;  %v2823_v15 = vpack.c.bf16 %v2761_v60, %v2761_v60 }
 0x24e   : > { %v2600_v58 = vrot.slane %v2593_v12, %v4939_v51  ;;  %v2765_v12 = vrot.slane %v2725_v52, %v4975_v17  ;;  %v2822_v16 = vpack.c.bf16 %v2757_v61, %v2757_v61 }
 0x24f   : > { %v2592_v20 = vrot.slane %v2585_v10, %v4939_v51 }
 0x250   : > { %v2607_v23 = vrot.slane %v2600_v58, %v4939_v51  ;;  %v2824_v26 = vpack.c.bf16 %v2765_v12, %v2765_v12  ;;  %v2893_v30 = vunpack.c.l.b16 %v2822_v16 }
 0x251   : > { %v2650_v24 = vadd.f32 %v2592_v20, %v546_v18 }
 0x252   : > { %v2651_v25 = vadd.f32 %v2607_v23, %v547_v19  ;;  %v2891_v23 = vunpack.c.l.b16 %v2820_v5  ;;  %v2895_v43 = vunpack.c.l.b16 %v2824_v26 }
 0x253   : > { %2662 = vst.msk [vmem:[#allocation2 + $0x8] sm:$0x3] %vm5099_vm0, %v2650_v24  ;;  %v2892_v24 = vunpack.c.l.b16 %v2821_v6 }
 0x254   : > { %2663 = vst.msk [vmem:[#allocation2 + $0xa] sm:$0x3] %vm5099_vm0, %v2651_v25  ;;  %v2825_v25 = vpack.c.bf16 %v2769_v11, %v2769_v11  ;;  %v2905_v56 = vrot.slane %v2891_v23, 7 }
 0x255   : > { %v2926_v38 = vrot.slane %v2892_v24, 7 }
 0x256   : > { %v2896_v41 = vunpack.c.l.b16 %v2825_v25 }
 0x25a   : > { %v2673_v48 = vld [vmem:[#allocation2 + $0x8] sm:$0x3] }
 0x25b   : > { %v2726_v1 = vmul.f32 %v2701_v44, %v2673_v48  ;;  %v2674_v4 = vld [vmem:[#allocation2 + $0xa] sm:$0x3]  ;;  %v2890_v44 = vunpack.c.l.b16 %v2819_v29 }
 0x25c   : > { %v2727_v10 = vmul.f32 %v2705_v62, %v2674_v4 }
 0x25d   : > { %v2777_v58 = vrot.slane %v2726_v1, %v4948_v57  ;;  %v2773_v18 = vrot.slane %v2726_v1, %v4975_v17 }
 0x25e   : > { %v2785_v31 = vrot.slane %v2727_v10, %v4948_v57  ;;  %v2781_v33 = vrot.slane %v2727_v10, %v4975_v17 }
 0x25f   : > { %v2827_v32 = vpack.c.bf16 %v2777_v58, %v2777_v58  ;;  %v2826_v34 = vpack.c.bf16 %v2773_v18, %v2773_v18 }
 0x260   : > { %v2828_v21 = vpack.c.bf16 %v2781_v33, %v2781_v33  ;;  %v4321_v33 = vld [vmem:[%s5413_s22 + $0x38] sm:$0xff]  }
 0x261   : > { %v2898_v48 = vunpack.c.l.b16 %v2827_v32  ;;  %v2897_v22 = vunpack.c.l.b16 %v2826_v34  ;;  %v4320_v32 = vld [vmem:[%s5413_s22 + $0x30] sm:$0xff]  }
 0x262   : > { %v2899_v39 = vunpack.c.l.b16 %v2828_v21  ;;  %3784 = vmatpush3.bf16.msra.mxu1 %v4320_v32  ;;  %v4322_v34 = vld [vmem:[#allocation10] sm:$0xff]  }
 0x263   : > { %v2932_v1 = vrot.slane %v2898_v48, 4  ;;  %3785 = vmatprep.subr.bf16.mxu1 %v4570_v8 }
 0x264   : > { %v2917_v16 = vrot.slane %v2899_v39, 3 }
 0x266   : > { %3786 = vmatpush3.bf16.msra.mxu1 %v4321_v33 }
 0x289   : > { %v2283_v46 = vpop.f32.mrb[12].mxu0 }
 0x28a   : > { %v2495_v47 = vpop.f32.mrb[12].mxu1  ;;  %v2285_v49 = vpop.f32.mrb[13].mxu0 }
 0x28b   : > { %v2497_v50 = vpop.f32.mrb[13].mxu1  ;;  %v2608_v53 = vcombine.low %v2283_v46, %v2285_v49  ;;  %v2287_v55 = vpop.f32.mrb[14].mxu0  ;;  %v2908_v46 = vrot.slane %v2893_v30, 6  ;;  %v2709_v49 = vrot.slane %v5298_v27, %v2708_v35 }
 0x28c   : > { %v2623_v54 = vcombine.low %v2495_v47, %v2497_v50  ;;  %v2499_v59 = vpop.f32.mrb[14].mxu1  ;;  %v2288_v63 = vpop.f32.mrb[15].mxu0  ;;  %v2829_v47 = vpack.c.bf16 %v2785_v31, %v2785_v31  ;;  %v2713_v50 = vrot.slane %v5298_v27, %v2712_v37  ;;  %v2907_v55 = vsel %vm2906_vm1, %v2905_v56, %v2889_v7  ;;  %v3702_v37 = vld [vmem:[#allocation7] ss:$0 sm:$0xff] }
 0x28d   : > { %v2500_v0 = vpop.f32.mrb[15].mxu1  ;;  %v2615_v2 = vrot.slane %v2608_v53, %v4939_v51  ;;  %v2927_v53 = vsel %vm2906_vm1, %v2926_v38, %v2890_v44  ;;  %v2911_v59 = vrot.slane %v2895_v43, 5  ;;  %v2910_v63 = vsel %vm2909_vm2, %v2908_v46, %v2907_v55  ;;  %v4323_v46 = vld [vmem:[#allocation10 + $0x8] sm:$0xff]  }
 0x28e   : > { %v2630_v3 = vrot.slane %v2623_v54, %v4939_v51  ;;  %v2930_v54 = vrot.slane %v2896_v41, 5  ;;  %v2900_v0 = vunpack.c.l.b16 %v2829_v47  ;;  %v2914_v27 = vrot.slane %v2897_v22, 4  ;;  %v3719_v47 = vld [vmem:[#allocation8] ss:$0 sm:$0xff] }
 0x28f   : > { %v2622_v13 = vrot.slane %v2615_v2, %v4939_v51  ;;  %v2913_v6 = vsel %vm2912_vm3, %v2911_v59, %v2910_v63 }
 0x290   : > { %v2637_v14 = vrot.slane %v2630_v3, %v4939_v51  ;;  %v2894_v51 = vunpack.c.l.b16 %v2823_v15  ;;  %v2916_v15 = vsel %vm2915_vm4, %v2914_v27, %v2913_v6 }
 0x291   : > { %v2652_v19 = vadd.f32 %v2622_v13, %v548_v36  ;;  %v2919_v25 = vsel %vm2918_vm5, %v2917_v16, %v2916_v15 }
 0x292   : > { %v2653_v20 = vadd.f32 %v2637_v14, %v549_v9  ;;  %v2928_v45 = vrot.slane %v2894_v51, 6  ;;  %v2934_v14 = vrot.slane %v2900_v0, 3 }
 0x293   : > { %2664 = vst.msk [vmem:[#allocation2 + $0xc] sm:$0x3] %vm5099_vm0, %v2652_v19 }
 0x294   : > { %2665 = vst.msk [vmem:[#allocation2 + $0xe] sm:$0x3] %vm5099_vm0, %v2653_v20  ;;  %v2929_v62 = vsel %vm2909_vm2, %v2928_v45, %v2927_v53 }
 0x295   : > { %v2931_v5 = vsel %vm2912_vm3, %v2930_v54, %v2929_v62 }
 0x296   : > { %v2933_v13 = vsel %vm2915_vm4, %v2932_v1, %v2931_v5 }
 0x297   : > { %v2935_v24 = vsel %vm2918_vm5, %v2934_v14, %v2933_v13 }
 0x29a   : > { %v2675_v42 = vld [vmem:[#allocation2 + $0xc] sm:$0x3] }
 0x29b   : > { %v2676_v52 = vld [vmem:[#allocation2 + $0xe] sm:$0x3]  ;;  %v2728_v60 = vmul.f32 %v2709_v49, %v2675_v42 }
 0x29c   : > { %v2729_v61 = vmul.f32 %v2713_v50, %v2676_v52  ;;  %v3728_v52 = vld [vmem:[#allocation11] ss:$0 sm:$0xff] }
 0x29d   : > { %v2793_v40 = vrot.slane %v2728_v60, %v4948_v57  ;;  %v2789_v3 = vrot.slane %v2728_v60, %v4975_v17 }
 0x29e   : > { %v2801_v2 = vrot.slane %v2729_v61, %v4948_v57  ;;  %v2797_v4 = vrot.slane %v2729_v61, %v4975_v17 }
 0x29f   : > { %v2831_v36 = vpack.c.bf16 %v2793_v40, %v2793_v40  ;;  %v2830_v11 = vpack.c.bf16 %v2789_v3, %v2789_v3 }
 0x2a0   : > { %v2833_v9 = vpack.c.bf16 %v2801_v2, %v2801_v2  ;;  %v2832_v12 = vpack.c.bf16 %v2797_v4, %v2797_v4 }
 0x2a1   : > { %v2902_v57 = vunpack.c.l.b16 %v2831_v36  ;;  %v2901_v58 = vunpack.c.l.b16 %v2830_v11 }
 0x2a2   : > { %v2904_v10 = vunpack.c.l.b16 %v2833_v9  ;;  %v2903_v18 = vunpack.c.l.b16 %v2832_v12 }
 0x2a3   : > { %v2936_v17 = vrot.slane %v2902_v57, 2  ;;  %v2920_v20 = vrot.slane %v2901_v58, 2 }
 0x2a4   : > { %v2938_v19 = vrot.slane %v2904_v10, 1  ;;  %v2923_v23 = vrot.slane %v2903_v18, 1 }
 0x2a5   : > { %v2937_v26 = vsel %vm2921_vm6, %v2936_v17, %v2935_v24  ;;  %v2922_v28 = vsel %vm2921_vm6, %v2920_v20, %v2919_v25 }
 0x2a6   : > { %v2939_v29 = vsel %vm2924_vm7, %v2938_v19, %v2937_v26  ;;  %v2925_v51 = vsel %vm2924_vm7, %v2923_v23, %v2922_v28 }
 0x2a7   : > { %v2941_v30 = vpack.c.b16 %v2939_v29, %v2939_v29  ;;  %v2940_v31 = vpack.c.b16 %v2925_v51, %v2925_v51 }
 0x2a9   : > { %3072 = vmatprep.mubr.bf16.mxu0 %v2941_v30 }
 0x2aa   : > { %3073 = vmatmul.mubr.bf16.vlgmr.msra.gmra.mrb[16].mxu0 %v2940_v31 }
 0x2ab   : > { %3795 = vmatprep.mubr.msk.bf16.mxu0 %vm4571_vm8, %v4570_v8  ;;  %3792 = vmatpush3.bf16.msra.mxu0 %v4322_v34 }
 0x2ac   : > { %3793 = vmatprep.subr.bf16.mxu0 %v4570_v8 }
 0x2af   : > { %3794 = vmatpush3.bf16.msra.mxu0 %v4323_v46 }
 0x37d   : > { %v3753_v35 = vpop.f32.mrb[16].mxu0 }
 0x37e   : > { %v3754_v56 = vpop.f32.mrb[17].mxu0 }
 0x37f   : > { %v3755_v38 = vadd.f32 %v3754_v56, %v3753_v35  ;;  %v3756_v41 = vpop.f32.mrb[18].mxu0 }
 0x380   : > { %v3757_v43 = vpop.f32.mrb[19].mxu0 }
 0x381   : > { %v3075_v7 = vadd.f32 %v3755_v38, %v3702_v37 }
 0x383   : > { %v3080_v44 = vmax.f32 %v3075_v7, 0.0 }
 0x385   : > { %v3081_v45 = vpack.c.bf16 %v3080_v44, %v3080_v44 }
 0x387   : > { %3788 = vmatmul.mubr.bf16.vlgmr.msra.gmra.mrb[16].mxu1 %v3081_v45 }
 0x45a   : > { %v3187_v48 = vpop.f32.mrb[16].mxu1 }
 0x45b   : > { %v3188_v21 = vadd.f32 %v3719_v47, %v3187_v48  ;;  %v3789_v22 = vpop.f32.mrb[17].mxu1 }
 0x45c   : > { %v3190_v49 = vpop.f32.mrb[18].mxu1 }
 0x45d   : > { %v3193_v50 = vmax.f32 %v3188_v21, 0.0  ;;  %v3790_v8 = vpop.f32.mrb[19].mxu1 }
 0x45f   : > { %v3194_v42 = vpack.c.bf16 %v3193_v50, %v3193_v50 }
 0x461   : > { %3796 = vmatmul.mubr.msk.bf16.vlgmr.msra.gmra.mrb[20].mxu0 %vm3218_vm9, %v3194_v42 }
 0x534   : > { %v3256_v53 = vpop.f32.mrb[20].mxu0 }
 0x535   : > { %v3257_v54 = vadd.f32 %v3728_v52, %v3256_v53  ;;  %v3797_v55 = vpop.f32.mrb[21].mxu0 }
 0x536   : > { %v3259_v59 = vpop.f32.mrb[22].mxu0 }
 0x537   : > { %3262 = vst [vmem:[%s490_s5] sm:$0xff] %v3257_v54  ;;  %v3798_v60 = vpop.f32.mrb[23].mxu0 }
 0x538 PF: > { %s25_s14 = sadd.s32 1, %s4556_s14   ;;  %s5415_s30 = smov %s4540_s10 }
 0x539   : > { %p22_p5 = scmp.ge.s32.totalorder %s25_s14, 4   ;;  %s5416_s10 = smov %s4544_s11 }
 0x53a   : > { %s5417_s11 = smov %s4816_s23  ;;  %s5418_s12 = smov %s4552_s13 }
 0x53b   : > { %s5419_s13 = smov %s5421_s15  ;;  %24 = sbr.rel (!%p22_p5) target bundleno = 11 (0xb), region = 130 }
 0x542   :  { %3282 = vsyncpa [#allocation4], 1 }
 0x543   :  { %3284 = vsyncpa [#allocation4 + $0x1], 1 }
 0x544   :  { %3285 = vsyncpa [#allocation6], 1 }
 0x545   :  { %3286 = vsyncpa [#allocation9], 1 }
 0x546   :  { %3287 = vsyncpa [#allocation12], 1 }

</bundles_post_ra>
